<compile_context>
chip_gen: v7x
topology: tpu7x:2x2x1
jax: 0.10.0
libtpu: 0.0.40
codegen_flags: <defaults>
</compile_context>

<pallas_src>
import jax
import jax.numpy as jnp
from jax.experimental import pallas as pl
from jax.experimental.pallas import tpu as pltpu

BN_EPS = 1e-5


# ----------------------------------------------------------------------------
# In-kernel helper: elementwise reduce across lane chunks.
#   v: (rows, k*out_w)  ->  (rows, out_w),  out[:, j] = op_i v[:, i*out_w + j]
# Uses log2(k) halving folds when k is a power of two, linear fold otherwise.
# ----------------------------------------------------------------------------
def _reduce_across_chunks(v, out_w, op):
    k = v.shape[-1] // out_w
    if (k & (k - 1)) == 0:                       # power of two
        while v.shape[-1] > out_w:
            half = v.shape[-1] // 2
            v = op(v[:, :half], v[:, half:])
        return v
    acc = v[:, :out_w]                           # generic fallback
    for i in range(1, k):
        acc = op(acc, v[:, i * out_w:(i + 1) * out_w])
    return acc


# ----------------------------------------------------------------------------
# Fused kernel: conv3x3+BN1+ReLU -> conv3x3+BN2 -> +residual -> CBAM channel
# gate -> CBAM spatial gate -> ReLU, all on one lane-dense (H, W*C) slab.
# ----------------------------------------------------------------------------
def _basic_block_kernel(x_ref, s1_ref, sc1_ref, b1_ref, s2_ref, sc2_ref,
                        b2_ref, fc1_ref, fc1b_ref, fc2f_ref, fc2bf_ref,
                        perm_ref, band_ref, spbn_ref, out_ref):
    f32 = jnp.float32
    H = x_ref.shape[1]
    WC = x_ref.shape[2]
    W = band_ref.shape[1] // 2
    C = WC // W

    x = x_ref[0]                                            # (H, WC) f32
    zrow = jnp.zeros((1, WC), f32)

    def conv3x3(v, s_ref):
        # Stride-1 "same" 3x3 conv as 3 banded bf16 MXU matmuls on the flat
        # slab.  The H halo is applied by shifting the f32 partial products
        # (single bf16 cast per conv input, all aligned accesses); the W halo
        # is folded into the precomputed band matrices.
        vb = v.astype(jnp.bfloat16)
        f0 = jnp.dot(vb, s_ref[0], preferred_element_type=f32)   # row h-1 taps
        f1 = jnp.dot(vb, s_ref[1], preferred_element_type=f32)   # row h   taps
        f2 = jnp.dot(vb, s_ref[2], preferred_element_type=f32)   # row h+1 taps
        return (f1
                + jnp.concatenate([zrow, f0[:H - 1, :]], axis=0)
                + jnp.concatenate([f2[1:, :], zrow], axis=0))

    # ---- conv1 + BN1 + ReLU -> conv2 + BN2 -> + residual (never leaves VMEM)
    y = jnp.maximum(conv3x3(x, s1_ref) * sc1_ref[...] + b1_ref[...], 0.0)
    y3 = conv3x3(y, s2_ref) * sc2_ref[...] + b2_ref[...] + x      # (H, WC)

    # ---- CBAM channel gate: global max/avg pool straight off the flat slab
    cmax = _reduce_across_chunks(jnp.max(y3, axis=0, keepdims=True),
                                 C, jnp.maximum)                  # (1, C)
    cavg = _reduce_across_chunks(jnp.sum(y3, axis=0, keepdims=True),
                                 C, jnp.add) * (1.0 / (H * W))    # (1, C)

    def mlp_hidden(v):
        return jnp.maximum(
            jnp.dot(v, fc1_ref[...], preferred_element_type=f32)
            + fc1b_ref[...], 0.0)

    h = mlp_hidden(cavg) + mlp_hidden(cmax)                       # (1, cr)
    # fc2 has the channel->flat broadcast folded in (bias counted twice, as in
    # mlp(avg)+mlp(max)); the gate comes out lane-dense.
    att_c = jax.nn.sigmoid(
        jnp.dot(h, fc2f_ref[...], preferred_element_type=f32)
        + fc2bf_ref[...])                                         # (1, WC)
    y4 = y3 * att_c                                               # gated map

    # ---- CBAM spatial gate: ChannelPool via an exact 0/1 lane permutation
    #      (w-major -> c-major), then the 7x7 conv as 7 banded matmuls that
    #      produce the lane-dense attention map directly (rrep folded in).
    t4 = jnp.dot(y4, perm_ref[...], preferred_element_type=f32)   # (H, WC)
    pmax = _reduce_across_chunks(t4, W, jnp.maximum)              # (H, W)
    pmean = _reduce_across_chunks(t4, W, jnp.add) * (1.0 / C)     # (H, W)

    zpad = jnp.zeros((3, 2 * W), f32)
    pool = jnp.concatenate(
        [zpad, jnp.concatenate([pmax, pmean], axis=-1), zpad], axis=0)

    acc = jnp.zeros((H, WC), f32)
    for dy in range(7):
        acc = acc + jnp.dot(pool[dy:dy + H, :].astype(jnp.bfloat16),
                            band_ref[dy], preferred_element_type=f32)
    att_s = jax.nn.sigmoid(acc * spbn_ref[0] + spbn_ref[1])       # (H, WC)

    out_ref[0] = jnp.maximum(y4 * att_s, 0.0)


# ----------------------------------------------------------------------------
# Wrapper-side weight folding (runs once per weight set, outside the jit).
# ----------------------------------------------------------------------------
def _conv_band_weights(w_hwio, W):
    """(KH,KW,Cin,Cout) conv weights -> (KH, W*Cin, W*Cout) band matrices."""
    KH, KW, Cin, Cout = w_hwio.shape
    pad = (KW - 1) // 2
    p = jnp.arange(W)[:, None, None]
    wv = jnp.arange(W)[None, :, None]
    dx = jnp.arange(KW)[None, None, :]
    ind = (p == wv + dx - pad).astype(w_hwio.dtype)        # (W, W, KW)
    band = jnp.einsum('pwx,yxio->ypiwo', ind, w_hwio)      # (KH, W, Cin, W, Cout)
    return band.reshape(KH, W * Cin, W * Cout)


def _spatial_band_weights(w_cyx, W):
    """(2, 7, 7) spatial-gate conv weights -> (2, 7, W, W) band matrices."""
    Cc, KH, KW = w_cyx.shape
    pad = (KW - 1) // 2
    p = jnp.arange(W)[:, None, None]
    wv = jnp.arange(W)[None, :, None]
    dx = jnp.arange(KW)[None, None, :]
    ind = (p == wv + dx - pad).astype(w_cyx.dtype)         # (W, W, KW)
    return jnp.einsum('pwx,cyx->cypw', ind, w_cyx)         # (2, KH, W, W)


def prepare_params(p, H, W):
    """Fold weights into kernel-ready layouts (hoisted out of the forward)."""
    f32 = jnp.float32
    C = p["conv1_w"].shape[2]
    planes = p["conv1_w"].shape[3]
    if C != planes or p["conv2_w"].shape[2] != planes:
        # TODO(synk): downsample / inplanes != planes / stride > 1 branch.
        raise NotImplementedError(
            "fused kernel assumes inplanes == planes and stride == 1")
    WC = W * C
    cr = p["fc1_w"].shape[1]

    kp = {
        "s1": _conv_band_weights(p["conv1_w"], W).astype(jnp.bfloat16),
        "s2": _conv_band_weights(p["conv2_w"], W).astype(jnp.bfloat16),
        "sc1": jnp.tile(p["bn1_scale"].astype(f32), W).reshape(1, WC),
        "b1": jnp.tile(p["bn1_bias"].astype(f32), W).reshape(1, WC),
        "sc2": jnp.tile(p["bn2_scale"].astype(f32), W).reshape(1, WC),
        "b2": jnp.tile(p["bn2_bias"].astype(f32), W).reshape(1, WC),
        "fc1": p["fc1_w"].astype(f32),                       # (C, cr)
        "fc1b": p["fc1_b"].astype(f32).reshape(1, cr),
        # crep folded into fc2: columns w*C + c carry fc2[:, c]
        "fc2f": jnp.tile(p["fc2_w"].astype(f32), (1, W)),    # (cr, WC)
        "fc2bf": 2.0 * jnp.tile(p["fc2_b"].astype(f32), W).reshape(1, WC),
        "spbn": jnp.stack([p["sp_bn_scale"], p["sp_bn_bias"]]).astype(f32),
    }

    # Exact 0/1 lane permutation: w-major (w*C + c) -> c-major (c*W + w).
    src = jnp.arange(WC)
    dst = (src % C) * W + src // C
    kp["perm"] = (dst[:, None] == jnp.arange(WC)[None, :]).astype(f32)

    # 7x7 spatial-gate conv as 7 banded matmuls with [max | mean] packed along
    # K and the spatial->flat broadcast (rrep) folded into the output columns.
    bw = _spatial_band_weights(p["sp_w"][0].astype(f32), W)  # (2, 7, W, W)
    bpk = jnp.concatenate([bw[0], bw[1]], axis=1)            # (7, 2W, W)
    kp["band"] = jnp.repeat(bpk, C, axis=-1).astype(jnp.bfloat16)  # (7, 2W, WC)
    return kp


# ----------------------------------------------------------------------------
# Public forward (NHWC).  A thin NCHW wrapper is provided for PyTorch-layout
# callers.
# ----------------------------------------------------------------------------
@jax.jit
def basic_block_forward(x_nhwc, kp):
    N, H, W, C = x_nhwc.shape
    WC = W * C
    if H % 8 != 0 or WC % 128 != 0:
        raise ValueError(
            f"unsupported shape H={H}, W*C={WC}: need H % 8 == 0 and "
            f"(W*C) % 128 == 0 for the (8,128) block constraint")
    if kp["s1"].shape != (3, WC, WC) or kp["band"].shape[1] != 2 * W \
            or kp["fc1"].shape[0] != C:
        raise ValueError("prepared params do not match the input shape")

    x_flat = x_nhwc.reshape(N, H, WC)                        # metadata-only

    out_flat = pl.pallas_call(
        _basic_block_kernel,
        out_shape=jax.ShapeDtypeStruct((N, H, WC), jnp.float32),
        grid=(N,),
        in_specs=[
            pl.BlockSpec((1, H, WC), lambda b: (b, 0, 0)),            # x
            pl.BlockSpec((3, WC, WC), lambda b: (0, 0, 0)),           # s1
            pl.BlockSpec((1, WC), lambda b: (0, 0)),                  # sc1
            pl.BlockSpec((1, WC), lambda b: (0, 0)),                  # b1
            pl.BlockSpec((3, WC, WC), lambda b: (0, 0, 0)),           # s2
            pl.BlockSpec((1, WC), lambda b: (0, 0)),                  # sc2
            pl.BlockSpec((1, WC), lambda b: (0, 0)),                  # b2
            pl.BlockSpec(kp["fc1"].shape, lambda b: (0, 0)),          # fc1
            pl.BlockSpec(kp["fc1b"].shape, lambda b: (0, 0)),         # fc1b
            pl.BlockSpec(kp["fc2f"].shape, lambda b: (0, 0)),         # fc2f
            pl.BlockSpec((1, WC), lambda b: (0, 0)),                  # fc2bf
            pl.BlockSpec((WC, WC), lambda b: (0, 0)),                 # perm
            pl.BlockSpec((7, 2 * W, WC), lambda b: (0, 0, 0)),        # band
            pl.BlockSpec(memory_space=pltpu.MemorySpace.SMEM),        # spbn
        ],
        out_specs=pl.BlockSpec((1, H, WC), lambda b: (b, 0, 0)),
        compiler_params=pltpu.CompilerParams(
            dimension_semantics=("parallel",)),
    )(x_flat, kp["s1"], kp["sc1"], kp["b1"], kp["s2"], kp["sc2"], kp["b2"],
      kp["fc1"], kp["fc1b"], kp["fc2f"], kp["fc2bf"], kp["perm"], kp["band"],
      kp["spbn"])

    return out_flat.reshape(N, H, W, C)


def basic_block_forward_nchw(x_nchw, kp):
    """PyTorch-layout convenience wrapper (adds two HBM transposes)."""
    x = jnp.transpose(x_nchw, (0, 2, 3, 1))
    return jnp.transpose(basic_block_forward(x, kp), (0, 3, 1, 2))


# ----------------------------------------------------------------------------
# Parameters (BN folded to inference-mode affine scale/bias).
# ----------------------------------------------------------------------------
def init_params(key, inplanes, planes, reduction=4):
    ks = jax.random.split(key, 10)

    def nrm(k, shape, s=0.1):
        return (s * jax.random.normal(k, shape)).astype(jnp.float32)

    def bn_fold(k, c):
        k1, k2, k3, k4 = jax.random.split(k, 4)
        gamma = 1.0 + 0.1 * jax.random.normal(k1, (c,))
        beta = 0.1 * jax.random.normal(k2, (c,))
        mean = 0.1 * jax.random.normal(k3, (c,))
        var = 0.5 + jnp.abs(jax.random.normal(k4, (c,)))
        scale = gamma / jnp.sqrt(var + BN_EPS)
        bias = beta - mean * scale
        return scale.astype(jnp.float32), bias.astype(jnp.float32)

    cr = max(planes // reduction, 1)
    p = {}
    p["conv1_w"] = nrm(ks[0], (3, 3, inplanes, planes))      # HWIO
    p["bn1_scale"], p["bn1_bias"] = bn_fold(ks[1], planes)
    p["conv2_w"] = nrm(ks[2], (3, 3, planes, planes))        # HWIO
    p["bn2_scale"], p["bn2_bias"] = bn_fold(ks[3], planes)
    p["fc1_w"] = nrm(ks[4], (planes, cr), 0.2)
    p["fc1_b"] = nrm(ks[5], (cr,), 0.1)
    p["fc2_w"] = nrm(ks[6], (cr, planes), 0.2)
    p["fc2_b"] = nrm(ks[7], (planes,), 0.1)
    p["sp_w"] = nrm(ks[8], (1, 2, 7, 7), 0.1)                # OIHW, 2 -> 1
    sp_scale, sp_bias = bn_fold(ks[9], 1)
    p["sp_bn_scale"] = sp_scale[0]
    p["sp_bn_bias"] = sp_bias[0]
    return p


# ----------------------------------------------------------------------------
# Pure-JAX reference (NHWC).  Conv operands (3x3 convs and the 7x7 spatial-
# gate conv) are cast to bfloat16 with f32 accumulation to mirror the kernel's
# documented mixed-precision policy; everything else stays f32.
# ----------------------------------------------------------------------------
def reference_forward(x, p):
    def conv(v, w_hwio, pad):
        return jax.lax.conv_general_dilated(
            v.astype(jnp.bfloat16), w_hwio.astype(jnp.bfloat16),
            (1, 1), ((pad, pad), (pad, pad)),
            dimension_numbers=("NHWC", "HWIO", "NHWC"),
            preferred_element_type=jnp.float32)

    out = jax.nn.relu(conv(x, p["conv1_w"], 1) * p["bn1_scale"] + p["bn1_bias"])
    out = conv(out, p["conv2_w"], 1) * p["bn2_scale"] + p["bn2_bias"] + x

    avg = jnp.mean(out, axis=(1, 2))                       # (N, C)
    mx = jnp.max(out, axis=(1, 2))

    def mlp(v):
        return (jnp.maximum(v @ p["fc1_w"] + p["fc1_b"], 0.0)
                @ p["fc2_w"] + p["fc2_b"])

    catt = jax.nn.sigmoid(mlp(avg) + mlp(mx))              # (N, C)
    out = out * catt[:, None, None, :]

    pool = jnp.stack([jnp.max(out, axis=-1), jnp.mean(out, axis=-1)], axis=-1)
    sp_w = jnp.transpose(p["sp_w"], (2, 3, 1, 0))          # OIHW -> HWIO
    satt = jax.lax.conv_general_dilated(
        pool.astype(jnp.bfloat16), sp_w.astype(jnp.bfloat16),
        (1, 1), ((3, 3), (3, 3)),
        dimension_numbers=("NHWC", "HWIO", "NHWC"),
        preferred_element_type=jnp.float32)
    satt = jax.nn.sigmoid(satt * p["sp_bn_scale"] + p["sp_bn_bias"])
    return jax.nn.relu(out * satt)


# ----------------------------------------------------------------------------
if __name__ == "__main__":
    N, H, W, C = 2, 16, 16, 16                  # inplanes == planes, stride 1
    key = jax.random.PRNGKey(0)
    kx, kw = jax.random.split(key)
    x = jax.random.normal(kx, (N, H, W, C), jnp.float32)   # NHWC
    params = init_params(kw, C, C, reduction=4)
    kparams = prepare_params(params, H, W)      # hoisted: once per weight set

    out = basic_block_forward(x, kparams)
    out = jax.block_until_ready(out)

    ref = reference_forward(x, params)
    err = float(jnp.max(jnp.abs(out - ref)))
    assert out.shape == (N, H, W, C), out.shape
    assert err < 5e-3, f"mismatch vs reference: max abs err = {err}"
    print("KERNEL_OK")
</pallas_src>

<mosaic_0001>
module attributes {stable_mosaic.version = 11 : i64} {
  func.func @_basic_block_kernel(%arg0: i32, %arg1: memref<1x16x256xf32, #tpu.memory_space<vmem>>, %arg2: memref<3x256x256xbf16, #tpu.memory_space<vmem>>, %arg3: memref<1x256xf32, #tpu.memory_space<vmem>>, %arg4: memref<1x256xf32, #tpu.memory_space<vmem>>, %arg5: memref<3x256x256xbf16, #tpu.memory_space<vmem>>, %arg6: memref<1x256xf32, #tpu.memory_space<vmem>>, %arg7: memref<1x256xf32, #tpu.memory_space<vmem>>, %arg8: memref<16x4xf32, #tpu.memory_space<vmem>>, %arg9: memref<1x4xf32, #tpu.memory_space<vmem>>, %arg10: memref<4x256xf32, #tpu.memory_space<vmem>>, %arg11: memref<1x256xf32, #tpu.memory_space<vmem>>, %arg12: memref<256x256xf32, #tpu.memory_space<vmem>>, %arg13: memref<7x32x256xbf16, #tpu.memory_space<vmem>>, %arg14: memref<2xf32, #tpu.memory_space<smem>>, %arg15: memref<1x16x256xf32, #tpu.memory_space<vmem>>) attributes {dimension_semantics = [#tpu.dimension_semantics<parallel>], iteration_bounds = array<i64: 2>, scalar_prefetch = 0 : i64, scratch_operands = 0 : i64, tpu.core_type = #tpu.core_type<tc>, window_params = [{transform_indices = @transform_0, window_bounds = array<i64: 1, 16, 256>}, {pipeline_mode = #tpu.pipeline_mode<synchronous>, transform_indices = @transform_1, window_bounds = array<i64: 3, 256, 256>}, {pipeline_mode = #tpu.pipeline_mode<synchronous>, transform_indices = @transform_2, window_bounds = array<i64: 1, 256>}, {pipeline_mode = #tpu.pipeline_mode<synchronous>, transform_indices = @transform_3, window_bounds = array<i64: 1, 256>}, {pipeline_mode = #tpu.pipeline_mode<synchronous>, transform_indices = @transform_4, window_bounds = array<i64: 3, 256, 256>}, {pipeline_mode = #tpu.pipeline_mode<synchronous>, transform_indices = @transform_5, window_bounds = array<i64: 1, 256>}, {pipeline_mode = #tpu.pipeline_mode<synchronous>, transform_indices = @transform_6, window_bounds = array<i64: 1, 256>}, {pipeline_mode = #tpu.pipeline_mode<synchronous>, transform_indices = @transform_7, window_bounds = array<i64: 16, 4>}, {pipeline_mode = #tpu.pipeline_mode<synchronous>, transform_indices = @transform_8, window_bounds = array<i64: 1, 4>}, {pipeline_mode = #tpu.pipeline_mode<synchronous>, transform_indices = @transform_9, window_bounds = array<i64: 4, 256>}, {pipeline_mode = #tpu.pipeline_mode<synchronous>, transform_indices = @transform_10, window_bounds = array<i64: 1, 256>}, {pipeline_mode = #tpu.pipeline_mode<synchronous>, transform_indices = @transform_11, window_bounds = array<i64: 256, 256>}, {pipeline_mode = #tpu.pipeline_mode<synchronous>, transform_indices = @transform_12, window_bounds = array<i64: 7, 32, 256>}, {transform_indices = @transform_13, window_bounds = array<i64: 2>}, {transform_indices = @transform_14, window_bounds = array<i64: 1, 16, 256>}]} {
    %c0 = arith.constant 0 : index
    %c0_0 = arith.constant 0 : index
    %c0_1 = arith.constant 0 : index
    %0 = vector.load %arg1[%c0, %c0_0, %c0_1] : memref<1x16x256xf32, #tpu.memory_space<vmem>>, vector<1x16x256xf32>
    %1 = vector.shape_cast %0 : vector<1x16x256xf32> to vector<16x256xf32>
    %cst = arith.constant 0.000000e+00 : f32
    %2 = vector.broadcast %cst : f32 to vector<1x256xf32>
    %3 = arith.truncf %1 : vector<16x256xf32> to vector<16x256xbf16>
    %c0_2 = arith.constant 0 : index
    %c0_3 = arith.constant 0 : index
    %c0_4 = arith.constant 0 : index
    %4 = vector.load %arg2[%c0_2, %c0_3, %c0_4] : memref<3x256x256xbf16, #tpu.memory_space<vmem>>, vector<1x256x256xbf16>
    %5 = vector.shape_cast %4 : vector<1x256x256xbf16> to vector<256x256xbf16>
    %cst_5 = arith.constant dense<0.000000e+00> : vector<16x256xf32>
    %6 = tpu.matmul %3, %5, %cst_5 {dimension_numbers = #tpu.dot_dimension_numbers<[1], [0], [0], [1], [0, 0, 1, 1], [], []>} : vector<16x256xbf16>, vector<256x256xbf16>, vector<16x256xf32> -> vector<16x256xf32>
    %c1 = arith.constant 1 : index
    %c0_6 = arith.constant 0 : index
    %c0_7 = arith.constant 0 : index
    %7 = vector.load %arg2[%c1, %c0_6, %c0_7] : memref<3x256x256xbf16, #tpu.memory_space<vmem>>, vector<1x256x256xbf16>
    %8 = vector.shape_cast %7 : vector<1x256x256xbf16> to vector<256x256xbf16>
    %cst_8 = arith.constant dense<0.000000e+00> : vector<16x256xf32>
    %9 = tpu.matmul %3, %8, %cst_8 {dimension_numbers = #tpu.dot_dimension_numbers<[1], [0], [0], [1], [0, 0, 1, 1], [], []>} : vector<16x256xbf16>, vector<256x256xbf16>, vector<16x256xf32> -> vector<16x256xf32>
    %c2 = arith.constant 2 : index
    %c0_9 = arith.constant 0 : index
    %c0_10 = arith.constant 0 : index
    %10 = vector.load %arg2[%c2, %c0_9, %c0_10] : memref<3x256x256xbf16, #tpu.memory_space<vmem>>, vector<1x256x256xbf16>
    %11 = vector.shape_cast %10 : vector<1x256x256xbf16> to vector<256x256xbf16>
    %cst_11 = arith.constant dense<0.000000e+00> : vector<16x256xf32>
    %12 = tpu.matmul %3, %11, %cst_11 {dimension_numbers = #tpu.dot_dimension_numbers<[1], [0], [0], [1], [0, 0, 1, 1], [], []>} : vector<16x256xbf16>, vector<256x256xbf16>, vector<16x256xf32> -> vector<16x256xf32>
    %13 = vector.extract_strided_slice %6 {offsets = [0, 0], sizes = [15, 256], strides = [1, 1]} : vector<16x256xf32> to vector<15x256xf32>
    %14 = tpu.concatenate %2, %13 in 0 : vector<1x256xf32>, vector<15x256xf32> -> vector<16x256xf32>
    %15 = arith.addf %9, %14 : vector<16x256xf32>
    %16 = vector.extract_strided_slice %12 {offsets = [1, 0], sizes = [15, 256], strides = [1, 1]} : vector<16x256xf32> to vector<15x256xf32>
    %17 = tpu.concatenate %16, %2 in 0 : vector<15x256xf32>, vector<1x256xf32> -> vector<16x256xf32>
    %18 = arith.addf %15, %17 : vector<16x256xf32>
    %c0_12 = arith.constant 0 : index
    %c0_13 = arith.constant 0 : index
    %19 = vector.load %arg3[%c0_12, %c0_13] : memref<1x256xf32, #tpu.memory_space<vmem>>, vector<1x256xf32>
    %20 = vector.broadcast %19 : vector<1x256xf32> to vector<16x256xf32>
    %21 = arith.mulf %18, %20 : vector<16x256xf32>
    %c0_14 = arith.constant 0 : index
    %c0_15 = arith.constant 0 : index
    %22 = vector.load %arg4[%c0_14, %c0_15] : memref<1x256xf32, #tpu.memory_space<vmem>>, vector<1x256xf32>
    %23 = vector.broadcast %22 : vector<1x256xf32> to vector<16x256xf32>
    %24 = arith.addf %21, %23 : vector<16x256xf32>
    %cst_16 = arith.constant 0.000000e+00 : f32
    %25 = vector.broadcast %cst_16 : f32 to vector<16x256xf32>
    %26 = arith.maximumf %24, %25 : vector<16x256xf32>
    %27 = arith.truncf %26 : vector<16x256xf32> to vector<16x256xbf16>
    %c0_17 = arith.constant 0 : index
    %c0_18 = arith.constant 0 : index
    %c0_19 = arith.constant 0 : index
    %28 = vector.load %arg5[%c0_17, %c0_18, %c0_19] : memref<3x256x256xbf16, #tpu.memory_space<vmem>>, vector<1x256x256xbf16>
    %29 = vector.shape_cast %28 : vector<1x256x256xbf16> to vector<256x256xbf16>
    %cst_20 = arith.constant dense<0.000000e+00> : vector<16x256xf32>
    %30 = tpu.matmul %27, %29, %cst_20 {dimension_numbers = #tpu.dot_dimension_numbers<[1], [0], [0], [1], [0, 0, 1, 1], [], []>} : vector<16x256xbf16>, vector<256x256xbf16>, vector<16x256xf32> -> vector<16x256xf32>
    %c1_21 = arith.constant 1 : index
    %c0_22 = arith.constant 0 : index
    %c0_23 = arith.constant 0 : index
    %31 = vector.load %arg5[%c1_21, %c0_22, %c0_23] : memref<3x256x256xbf16, #tpu.memory_space<vmem>>, vector<1x256x256xbf16>
    %32 = vector.shape_cast %31 : vector<1x256x256xbf16> to vector<256x256xbf16>
    %cst_24 = arith.constant dense<0.000000e+00> : vector<16x256xf32>
    %33 = tpu.matmul %27, %32, %cst_24 {dimension_numbers = #tpu.dot_dimension_numbers<[1], [0], [0], [1], [0, 0, 1, 1], [], []>} : vector<16x256xbf16>, vector<256x256xbf16>, vector<16x256xf32> -> vector<16x256xf32>
    %c2_25 = arith.constant 2 : index
    %c0_26 = arith.constant 0 : index
    %c0_27 = arith.constant 0 : index
    %34 = vector.load %arg5[%c2_25, %c0_26, %c0_27] : memref<3x256x256xbf16, #tpu.memory_space<vmem>>, vector<1x256x256xbf16>
    %35 = vector.shape_cast %34 : vector<1x256x256xbf16> to vector<256x256xbf16>
    %cst_28 = arith.constant dense<0.000000e+00> : vector<16x256xf32>
    %36 = tpu.matmul %27, %35, %cst_28 {dimension_numbers = #tpu.dot_dimension_numbers<[1], [0], [0], [1], [0, 0, 1, 1], [], []>} : vector<16x256xbf16>, vector<256x256xbf16>, vector<16x256xf32> -> vector<16x256xf32>
    %37 = vector.extract_strided_slice %30 {offsets = [0, 0], sizes = [15, 256], strides = [1, 1]} : vector<16x256xf32> to vector<15x256xf32>
    %38 = tpu.concatenate %2, %37 in 0 : vector<1x256xf32>, vector<15x256xf32> -> vector<16x256xf32>
    %39 = arith.addf %33, %38 : vector<16x256xf32>
    %40 = vector.extract_strided_slice %36 {offsets = [1, 0], sizes = [15, 256], strides = [1, 1]} : vector<16x256xf32> to vector<15x256xf32>
    %41 = tpu.concatenate %40, %2 in 0 : vector<15x256xf32>, vector<1x256xf32> -> vector<16x256xf32>
    %42 = arith.addf %39, %41 : vector<16x256xf32>
    %c0_29 = arith.constant 0 : index
    %c0_30 = arith.constant 0 : index
    %43 = vector.load %arg6[%c0_29, %c0_30] : memref<1x256xf32, #tpu.memory_space<vmem>>, vector<1x256xf32>
    %44 = vector.broadcast %43 : vector<1x256xf32> to vector<16x256xf32>
    %45 = arith.mulf %42, %44 : vector<16x256xf32>
    %c0_31 = arith.constant 0 : index
    %c0_32 = arith.constant 0 : index
    %46 = vector.load %arg7[%c0_31, %c0_32] : memref<1x256xf32, #tpu.memory_space<vmem>>, vector<1x256xf32>
    %47 = vector.broadcast %46 : vector<1x256xf32> to vector<16x256xf32>
    %48 = arith.addf %45, %47 : vector<16x256xf32>
    %49 = arith.addf %48, %1 : vector<16x256xf32>
    %cst_33 = arith.constant dense<0xFF800000> : vector<256xf32>
    %50 = vector.multi_reduction <maximumf>, %49, %cst_33 [0] : vector<16x256xf32> to vector<256xf32>
    %51 = vector.shape_cast %50 : vector<256xf32> to vector<1x256xf32>
    %52 = vector.extract_strided_slice %51 {offsets = [0, 0], sizes = [1, 128], strides = [1, 1]} : vector<1x256xf32> to vector<1x128xf32>
    %53 = vector.extract_strided_slice %51 {offsets = [0, 128], sizes = [1, 128], strides = [1, 1]} : vector<1x256xf32> to vector<1x128xf32>
    %54 = arith.maximumf %52, %53 : vector<1x128xf32>
    %55 = vector.extract_strided_slice %54 {offsets = [0, 0], sizes = [1, 64], strides = [1, 1]} : vector<1x128xf32> to vector<1x64xf32>
    %56 = vector.extract_strided_slice %54 {offsets = [0, 64], sizes = [1, 64], strides = [1, 1]} : vector<1x128xf32> to vector<1x64xf32>
    %57 = arith.maximumf %55, %56 : vector<1x64xf32>
    %58 = vector.extract_strided_slice %57 {offsets = [0, 0], sizes = [1, 32], strides = [1, 1]} : vector<1x64xf32> to vector<1x32xf32>
    %59 = vector.extract_strided_slice %57 {offsets = [0, 32], sizes = [1, 32], strides = [1, 1]} : vector<1x64xf32> to vector<1x32xf32>
    %60 = arith.maximumf %58, %59 : vector<1x32xf32>
    %61 = vector.extract_strided_slice %60 {offsets = [0, 0], sizes = [1, 16], strides = [1, 1]} : vector<1x32xf32> to vector<1x16xf32>
    %62 = vector.extract_strided_slice %60 {offsets = [0, 16], sizes = [1, 16], strides = [1, 1]} : vector<1x32xf32> to vector<1x16xf32>
    %63 = arith.maximumf %61, %62 : vector<1x16xf32>
    %cst_34 = arith.constant dense<0.000000e+00> : vector<256xf32>
    %64 = vector.multi_reduction <add>, %49, %cst_34 [0] : vector<16x256xf32> to vector<256xf32>
    %65 = vector.shape_cast %64 : vector<256xf32> to vector<1x256xf32>
    %66 = vector.extract_strided_slice %65 {offsets = [0, 0], sizes = [1, 128], strides = [1, 1]} : vector<1x256xf32> to vector<1x128xf32>
    %67 = vector.extract_strided_slice %65 {offsets = [0, 128], sizes = [1, 128], strides = [1, 1]} : vector<1x256xf32> to vector<1x128xf32>
    %68 = arith.addf %66, %67 : vector<1x128xf32>
    %69 = vector.extract_strided_slice %68 {offsets = [0, 0], sizes = [1, 64], strides = [1, 1]} : vector<1x128xf32> to vector<1x64xf32>
    %70 = vector.extract_strided_slice %68 {offsets = [0, 64], sizes = [1, 64], strides = [1, 1]} : vector<1x128xf32> to vector<1x64xf32>
    %71 = arith.addf %69, %70 : vector<1x64xf32>
    %72 = vector.extract_strided_slice %71 {offsets = [0, 0], sizes = [1, 32], strides = [1, 1]} : vector<1x64xf32> to vector<1x32xf32>
    %73 = vector.extract_strided_slice %71 {offsets = [0, 32], sizes = [1, 32], strides = [1, 1]} : vector<1x64xf32> to vector<1x32xf32>
    %74 = arith.addf %72, %73 : vector<1x32xf32>
    %75 = vector.extract_strided_slice %74 {offsets = [0, 0], sizes = [1, 16], strides = [1, 1]} : vector<1x32xf32> to vector<1x16xf32>
    %76 = vector.extract_strided_slice %74 {offsets = [0, 16], sizes = [1, 16], strides = [1, 1]} : vector<1x32xf32> to vector<1x16xf32>
    %77 = arith.addf %75, %76 : vector<1x16xf32>
    %cst_35 = arith.constant 3.906250e-03 : f32
    %78 = vector.broadcast %cst_35 : f32 to vector<1x16xf32>
    %79 = arith.mulf %77, %78 : vector<1x16xf32>
    %c0_36 = arith.constant 0 : index
    %c0_37 = arith.constant 0 : index
    %80 = vector.load %arg8[%c0_36, %c0_37] : memref<16x4xf32, #tpu.memory_space<vmem>>, vector<16x4xf32>
    %cst_38 = arith.constant dense<0.000000e+00> : vector<1x4xf32>
    %81 = tpu.matmul %79, %80, %cst_38 {dimension_numbers = #tpu.dot_dimension_numbers<[1], [0], [0], [1], [0, 0, 1, 1], [], []>} : vector<1x16xf32>, vector<16x4xf32>, vector<1x4xf32> -> vector<1x4xf32>
    %c0_39 = arith.constant 0 : index
    %c0_40 = arith.constant 0 : index
    %82 = vector.load %arg9[%c0_39, %c0_40] : memref<1x4xf32, #tpu.memory_space<vmem>>, vector<1x4xf32>
    %83 = arith.addf %81, %82 : vector<1x4xf32>
    %cst_41 = arith.constant 0.000000e+00 : f32
    %84 = vector.broadcast %cst_41 : f32 to vector<1x4xf32>
    %85 = arith.maximumf %83, %84 : vector<1x4xf32>
    %c0_42 = arith.constant 0 : index
    %c0_43 = arith.constant 0 : index
    %86 = vector.load %arg8[%c0_42, %c0_43] : memref<16x4xf32, #tpu.memory_space<vmem>>, vector<16x4xf32>
    %cst_44 = arith.constant dense<0.000000e+00> : vector<1x4xf32>
    %87 = tpu.matmul %63, %86, %cst_44 {dimension_numbers = #tpu.dot_dimension_numbers<[1], [0], [0], [1], [0, 0, 1, 1], [], []>} : vector<1x16xf32>, vector<16x4xf32>, vector<1x4xf32> -> vector<1x4xf32>
    %c0_45 = arith.constant 0 : index
    %c0_46 = arith.constant 0 : index
    %88 = vector.load %arg9[%c0_45, %c0_46] : memref<1x4xf32, #tpu.memory_space<vmem>>, vector<1x4xf32>
    %89 = arith.addf %87, %88 : vector<1x4xf32>
    %cst_47 = arith.constant 0.000000e+00 : f32
    %90 = vector.broadcast %cst_47 : f32 to vector<1x4xf32>
    %91 = arith.maximumf %89, %90 : vector<1x4xf32>
    %92 = arith.addf %85, %91 : vector<1x4xf32>
    %c0_48 = arith.constant 0 : index
    %c0_49 = arith.constant 0 : index
    %93 = vector.load %arg10[%c0_48, %c0_49] : memref<4x256xf32, #tpu.memory_space<vmem>>, vector<4x256xf32>
    %cst_50 = arith.constant dense<0.000000e+00> : vector<1x256xf32>
    %94 = tpu.matmul %92, %93, %cst_50 {dimension_numbers = #tpu.dot_dimension_numbers<[1], [0], [0], [1], [0, 0, 1, 1], [], []>} : vector<1x4xf32>, vector<4x256xf32>, vector<1x256xf32> -> vector<1x256xf32>
    %c0_51 = arith.constant 0 : index
    %c0_52 = arith.constant 0 : index
    %95 = vector.load %arg11[%c0_51, %c0_52] : memref<1x256xf32, #tpu.memory_space<vmem>>, vector<1x256xf32>
    %96 = arith.addf %94, %95 : vector<1x256xf32>
    %97 = arith.negf %96 : vector<1x256xf32>
    %98 = math.exp %97 : vector<1x256xf32>
    %cst_53 = arith.constant 1.000000e+00 : f32
    %99 = vector.broadcast %cst_53 : f32 to vector<1x256xf32>
    %100 = arith.addf %99, %98 : vector<1x256xf32>
    %101 = arith.divf %99, %100 : vector<1x256xf32>
    %102 = vector.broadcast %101 : vector<1x256xf32> to vector<16x256xf32>
    %103 = arith.mulf %49, %102 : vector<16x256xf32>
    %c0_54 = arith.constant 0 : index
    %c0_55 = arith.constant 0 : index
    %104 = vector.load %arg12[%c0_54, %c0_55] : memref<256x256xf32, #tpu.memory_space<vmem>>, vector<256x256xf32>
    %cst_56 = arith.constant dense<0.000000e+00> : vector<16x256xf32>
    %105 = tpu.matmul %103, %104, %cst_56 {dimension_numbers = #tpu.dot_dimension_numbers<[1], [0], [0], [1], [0, 0, 1, 1], [], []>} : vector<16x256xf32>, vector<256x256xf32>, vector<16x256xf32> -> vector<16x256xf32>
    %106 = vector.extract_strided_slice %105 {offsets = [0, 0], sizes = [16, 128], strides = [1, 1]} : vector<16x256xf32> to vector<16x128xf32>
    %107 = vector.extract_strided_slice %105 {offsets = [0, 128], sizes = [16, 128], strides = [1, 1]} : vector<16x256xf32> to vector<16x128xf32>
    %108 = arith.maximumf %106, %107 : vector<16x128xf32>
    %109 = vector.extract_strided_slice %108 {offsets = [0, 0], sizes = [16, 64], strides = [1, 1]} : vector<16x128xf32> to vector<16x64xf32>
    %110 = vector.extract_strided_slice %108 {offsets = [0, 64], sizes = [16, 64], strides = [1, 1]} : vector<16x128xf32> to vector<16x64xf32>
    %111 = arith.maximumf %109, %110 : vector<16x64xf32>
    %112 = vector.extract_strided_slice %111 {offsets = [0, 0], sizes = [16, 32], strides = [1, 1]} : vector<16x64xf32> to vector<16x32xf32>
    %113 = vector.extract_strided_slice %111 {offsets = [0, 32], sizes = [16, 32], strides = [1, 1]} : vector<16x64xf32> to vector<16x32xf32>
    %114 = arith.maximumf %112, %113 : vector<16x32xf32>
    %115 = vector.extract_strided_slice %114 {offsets = [0, 0], sizes = [16, 16], strides = [1, 1]} : vector<16x32xf32> to vector<16x16xf32>
    %116 = vector.extract_strided_slice %114 {offsets = [0, 16], sizes = [16, 16], strides = [1, 1]} : vector<16x32xf32> to vector<16x16xf32>
    %117 = arith.maximumf %115, %116 : vector<16x16xf32>
    %118 = vector.extract_strided_slice %105 {offsets = [0, 0], sizes = [16, 128], strides = [1, 1]} : vector<16x256xf32> to vector<16x128xf32>
    %119 = vector.extract_strided_slice %105 {offsets = [0, 128], sizes = [16, 128], strides = [1, 1]} : vector<16x256xf32> to vector<16x128xf32>
    %120 = arith.addf %118, %119 : vector<16x128xf32>
    %121 = vector.extract_strided_slice %120 {offsets = [0, 0], sizes = [16, 64], strides = [1, 1]} : vector<16x128xf32> to vector<16x64xf32>
    %122 = vector.extract_strided_slice %120 {offsets = [0, 64], sizes = [16, 64], strides = [1, 1]} : vector<16x128xf32> to vector<16x64xf32>
    %123 = arith.addf %121, %122 : vector<16x64xf32>
    %124 = vector.extract_strided_slice %123 {offsets = [0, 0], sizes = [16, 32], strides = [1, 1]} : vector<16x64xf32> to vector<16x32xf32>
    %125 = vector.extract_strided_slice %123 {offsets = [0, 32], sizes = [16, 32], strides = [1, 1]} : vector<16x64xf32> to vector<16x32xf32>
    %126 = arith.addf %124, %125 : vector<16x32xf32>
    %127 = vector.extract_strided_slice %126 {offsets = [0, 0], sizes = [16, 16], strides = [1, 1]} : vector<16x32xf32> to vector<16x16xf32>
    %128 = vector.extract_strided_slice %126 {offsets = [0, 16], sizes = [16, 16], strides = [1, 1]} : vector<16x32xf32> to vector<16x16xf32>
    %129 = arith.addf %127, %128 : vector<16x16xf32>
    %cst_57 = arith.constant 6.250000e-02 : f32
    %130 = vector.broadcast %cst_57 : f32 to vector<16x16xf32>
    %131 = arith.mulf %129, %130 : vector<16x16xf32>
    %cst_58 = arith.constant 0.000000e+00 : f32
    %132 = vector.broadcast %cst_58 : f32 to vector<3x32xf32>
    %133 = tpu.concatenate %117, %131 in 1 : vector<16x16xf32>, vector<16x16xf32> -> vector<16x32xf32>
    %134 = tpu.concatenate %132, %133, %132 in 0 : vector<3x32xf32>, vector<16x32xf32>, vector<3x32xf32> -> vector<22x32xf32>
    %cst_59 = arith.constant 0.000000e+00 : f32
    %135 = vector.broadcast %cst_59 : f32 to vector<16x256xf32>
    %136 = vector.extract_strided_slice %134 {offsets = [0, 0], sizes = [16, 32], strides = [1, 1]} : vector<22x32xf32> to vector<16x32xf32>
    %137 = arith.truncf %136 : vector<16x32xf32> to vector<16x32xbf16>
    %c0_60 = arith.constant 0 : index
    %c0_61 = arith.constant 0 : index
    %c0_62 = arith.constant 0 : index
    %138 = vector.load %arg13[%c0_60, %c0_61, %c0_62] : memref<7x32x256xbf16, #tpu.memory_space<vmem>>, vector<1x32x256xbf16>
    %139 = vector.shape_cast %138 : vector<1x32x256xbf16> to vector<32x256xbf16>
    %cst_63 = arith.constant dense<0.000000e+00> : vector<16x256xf32>
    %140 = tpu.matmul %137, %139, %cst_63 {dimension_numbers = #tpu.dot_dimension_numbers<[1], [0], [0], [1], [0, 0, 1, 1], [], []>} : vector<16x32xbf16>, vector<32x256xbf16>, vector<16x256xf32> -> vector<16x256xf32>
    %141 = arith.addf %135, %140 : vector<16x256xf32>
    %142 = vector.extract_strided_slice %134 {offsets = [1, 0], sizes = [16, 32], strides = [1, 1]} : vector<22x32xf32> to vector<16x32xf32>
    %143 = arith.truncf %142 : vector<16x32xf32> to vector<16x32xbf16>
    %c1_64 = arith.constant 1 : index
    %c0_65 = arith.constant 0 : index
    %c0_66 = arith.constant 0 : index
    %144 = vector.load %arg13[%c1_64, %c0_65, %c0_66] : memref<7x32x256xbf16, #tpu.memory_space<vmem>>, vector<1x32x256xbf16>
    %145 = vector.shape_cast %144 : vector<1x32x256xbf16> to vector<32x256xbf16>
    %cst_67 = arith.constant dense<0.000000e+00> : vector<16x256xf32>
    %146 = tpu.matmul %143, %145, %cst_67 {dimension_numbers = #tpu.dot_dimension_numbers<[1], [0], [0], [1], [0, 0, 1, 1], [], []>} : vector<16x32xbf16>, vector<32x256xbf16>, vector<16x256xf32> -> vector<16x256xf32>
    %147 = arith.addf %141, %146 : vector<16x256xf32>
    %148 = vector.extract_strided_slice %134 {offsets = [2, 0], sizes = [16, 32], strides = [1, 1]} : vector<22x32xf32> to vector<16x32xf32>
    %149 = arith.truncf %148 : vector<16x32xf32> to vector<16x32xbf16>
    %c2_68 = arith.constant 2 : index
    %c0_69 = arith.constant 0 : index
    %c0_70 = arith.constant 0 : index
    %150 = vector.load %arg13[%c2_68, %c0_69, %c0_70] : memref<7x32x256xbf16, #tpu.memory_space<vmem>>, vector<1x32x256xbf16>
    %151 = vector.shape_cast %150 : vector<1x32x256xbf16> to vector<32x256xbf16>
    %cst_71 = arith.constant dense<0.000000e+00> : vector<16x256xf32>
    %152 = tpu.matmul %149, %151, %cst_71 {dimension_numbers = #tpu.dot_dimension_numbers<[1], [0], [0], [1], [0, 0, 1, 1], [], []>} : vector<16x32xbf16>, vector<32x256xbf16>, vector<16x256xf32> -> vector<16x256xf32>
    %153 = arith.addf %147, %152 : vector<16x256xf32>
    %154 = vector.extract_strided_slice %134 {offsets = [3, 0], sizes = [16, 32], strides = [1, 1]} : vector<22x32xf32> to vector<16x32xf32>
    %155 = arith.truncf %154 : vector<16x32xf32> to vector<16x32xbf16>
    %c3 = arith.constant 3 : index
    %c0_72 = arith.constant 0 : index
    %c0_73 = arith.constant 0 : index
    %156 = vector.load %arg13[%c3, %c0_72, %c0_73] : memref<7x32x256xbf16, #tpu.memory_space<vmem>>, vector<1x32x256xbf16>
    %157 = vector.shape_cast %156 : vector<1x32x256xbf16> to vector<32x256xbf16>
    %cst_74 = arith.constant dense<0.000000e+00> : vector<16x256xf32>
    %158 = tpu.matmul %155, %157, %cst_74 {dimension_numbers = #tpu.dot_dimension_numbers<[1], [0], [0], [1], [0, 0, 1, 1], [], []>} : vector<16x32xbf16>, vector<32x256xbf16>, vector<16x256xf32> -> vector<16x256xf32>
    %159 = arith.addf %153, %158 : vector<16x256xf32>
    %160 = vector.extract_strided_slice %134 {offsets = [4, 0], sizes = [16, 32], strides = [1, 1]} : vector<22x32xf32> to vector<16x32xf32>
    %161 = arith.truncf %160 : vector<16x32xf32> to vector<16x32xbf16>
    %c4 = arith.constant 4 : index
    %c0_75 = arith.constant 0 : index
    %c0_76 = arith.constant 0 : index
    %162 = vector.load %arg13[%c4, %c0_75, %c0_76] : memref<7x32x256xbf16, #tpu.memory_space<vmem>>, vector<1x32x256xbf16>
    %163 = vector.shape_cast %162 : vector<1x32x256xbf16> to vector<32x256xbf16>
    %cst_77 = arith.constant dense<0.000000e+00> : vector<16x256xf32>
    %164 = tpu.matmul %161, %163, %cst_77 {dimension_numbers = #tpu.dot_dimension_numbers<[1], [0], [0], [1], [0, 0, 1, 1], [], []>} : vector<16x32xbf16>, vector<32x256xbf16>, vector<16x256xf32> -> vector<16x256xf32>
    %165 = arith.addf %159, %164 : vector<16x256xf32>
    %166 = vector.extract_strided_slice %134 {offsets = [5, 0], sizes = [16, 32], strides = [1, 1]} : vector<22x32xf32> to vector<16x32xf32>
    %167 = arith.truncf %166 : vector<16x32xf32> to vector<16x32xbf16>
    %c5 = arith.constant 5 : index
    %c0_78 = arith.constant 0 : index
    %c0_79 = arith.constant 0 : index
    %168 = vector.load %arg13[%c5, %c0_78, %c0_79] : memref<7x32x256xbf16, #tpu.memory_space<vmem>>, vector<1x32x256xbf16>
    %169 = vector.shape_cast %168 : vector<1x32x256xbf16> to vector<32x256xbf16>
    %cst_80 = arith.constant dense<0.000000e+00> : vector<16x256xf32>
    %170 = tpu.matmul %167, %169, %cst_80 {dimension_numbers = #tpu.dot_dimension_numbers<[1], [0], [0], [1], [0, 0, 1, 1], [], []>} : vector<16x32xbf16>, vector<32x256xbf16>, vector<16x256xf32> -> vector<16x256xf32>
    %171 = arith.addf %165, %170 : vector<16x256xf32>
    %172 = vector.extract_strided_slice %134 {offsets = [6, 0], sizes = [16, 32], strides = [1, 1]} : vector<22x32xf32> to vector<16x32xf32>
    %173 = arith.truncf %172 : vector<16x32xf32> to vector<16x32xbf16>
    %c6 = arith.constant 6 : index
    %c0_81 = arith.constant 0 : index
    %c0_82 = arith.constant 0 : index
    %174 = vector.load %arg13[%c6, %c0_81, %c0_82] : memref<7x32x256xbf16, #tpu.memory_space<vmem>>, vector<1x32x256xbf16>
    %175 = vector.shape_cast %174 : vector<1x32x256xbf16> to vector<32x256xbf16>
    %cst_83 = arith.constant dense<0.000000e+00> : vector<16x256xf32>
    %176 = tpu.matmul %173, %175, %cst_83 {dimension_numbers = #tpu.dot_dimension_numbers<[1], [0], [0], [1], [0, 0, 1, 1], [], []>} : vector<16x32xbf16>, vector<32x256xbf16>, vector<16x256xf32> -> vector<16x256xf32>
    %177 = arith.addf %171, %176 : vector<16x256xf32>
    %c0_84 = arith.constant 0 : index
    %178 = memref.load %arg14[%c0_84] : memref<2xf32, #tpu.memory_space<smem>>
    %179 = vector.broadcast %178 : f32 to vector<16x256xf32>
    %180 = arith.mulf %177, %179 : vector<16x256xf32>
    %c1_85 = arith.constant 1 : index
    %181 = memref.load %arg14[%c1_85] : memref<2xf32, #tpu.memory_space<smem>>
    %182 = vector.broadcast %181 : f32 to vector<16x256xf32>
    %183 = arith.addf %180, %182 : vector<16x256xf32>
    %184 = arith.negf %183 : vector<16x256xf32>
    %185 = math.exp %184 : vector<16x256xf32>
    %cst_86 = arith.constant 1.000000e+00 : f32
    %186 = vector.broadcast %cst_86 : f32 to vector<16x256xf32>
    %187 = arith.addf %186, %185 : vector<16x256xf32>
    %188 = arith.divf %186, %187 : vector<16x256xf32>
    %189 = arith.mulf %103, %188 : vector<16x256xf32>
    %cst_87 = arith.constant 0.000000e+00 : f32
    %190 = vector.broadcast %cst_87 : f32 to vector<16x256xf32>
    %191 = arith.maximumf %189, %190 : vector<16x256xf32>
    %c0_88 = arith.constant 0 : index
    %c0_89 = arith.constant 0 : index
    %c0_90 = arith.constant 0 : index
    %192 = vector.load %arg15[%c0_88, %c0_89, %c0_90] : memref<1x16x256xf32, #tpu.memory_space<vmem>>, vector<1x16x256xf32>
    %193 = vector.shape_cast %192 : vector<1x16x256xf32> to vector<16x256xf32>
    %194 = vector.shape_cast %191 : vector<16x256xf32> to vector<1x16x256xf32>
    tpu.vector_store %arg15[%c0_88, %c0_89, %c0_90], %194 {strides = array<i32>} : memref<1x16x256xf32, #tpu.memory_space<vmem>>, vector<1x16x256xf32>,
    return
  }
  func.func @transform_0(%arg0: i32) -> (i32, i32, i32) {
    %c0_i32 = arith.constant 0 : i32
    %c0_i32_0 = arith.constant 0 : i32
    %c0_i32_1 = arith.constant 0 : i32
    return %arg0, %c0_i32, %c0_i32_0 : i32, i32, i32
  }
  func.func @transform_1(%arg0: i32) -> (i32, i32, i32) {
    %c0_i32 = arith.constant 0 : i32
    %c0_i32_0 = arith.constant 0 : i32
    %c0_i32_1 = arith.constant 0 : i32
    %c0_i32_2 = arith.constant 0 : i32
    return %c0_i32, %c0_i32_0, %c0_i32_1 : i32, i32, i32
  }
  func.func @transform_2(%arg0: i32) -> (i32, i32) {
    %c0_i32 = arith.constant 0 : i32
    %c0_i32_0 = arith.constant 0 : i32
    %c0_i32_1 = arith.constant 0 : i32
    return %c0_i32, %c0_i32_0 : i32, i32
  }
  func.func @transform_3(%arg0: i32) -> (i32, i32) {
    %c0_i32 = arith.constant 0 : i32
    %c0_i32_0 = arith.constant 0 : i32
    %c0_i32_1 = arith.constant 0 : i32
    return %c0_i32, %c0_i32_0 : i32, i32
  }
  func.func @transform_4(%arg0: i32) -> (i32, i32, i32) {
    %c0_i32 = arith.constant 0 : i32
    %c0_i32_0 = arith.constant 0 : i32
    %c0_i32_1 = arith.constant 0 : i32
    %c0_i32_2 = arith.constant 0 : i32
    return %c0_i32, %c0_i32_0, %c0_i32_1 : i32, i32, i32
  }
  func.func @transform_5(%arg0: i32) -> (i32, i32) {
    %c0_i32 = arith.constant 0 : i32
    %c0_i32_0 = arith.constant 0 : i32
    %c0_i32_1 = arith.constant 0 : i32
    return %c0_i32, %c0_i32_0 : i32, i32
  }
  func.func @transform_6(%arg0: i32) -> (i32, i32) {
    %c0_i32 = arith.constant 0 : i32
    %c0_i32_0 = arith.constant 0 : i32
    %c0_i32_1 = arith.constant 0 : i32
    return %c0_i32, %c0_i32_0 : i32, i32
  }
  func.func @transform_7(%arg0: i32) -> (i32, i32) {
    %c0_i32 = arith.constant 0 : i32
    %c0_i32_0 = arith.constant 0 : i32
    %c0_i32_1 = arith.constant 0 : i32
    return %c0_i32, %c0_i32_0 : i32, i32
  }
  func.func @transform_8(%arg0: i32) -> (i32, i32) {
    %c0_i32 = arith.constant 0 : i32
    %c0_i32_0 = arith.constant 0 : i32
    %c0_i32_1 = arith.constant 0 : i32
    return %c0_i32, %c0_i32_0 : i32, i32
  }
  func.func @transform_9(%arg0: i32) -> (i32, i32) {
    %c0_i32 = arith.constant 0 : i32
    %c0_i32_0 = arith.constant 0 : i32
    %c0_i32_1 = arith.constant 0 : i32
    return %c0_i32, %c0_i32_0 : i32, i32
  }
  func.func @transform_10(%arg0: i32) -> (i32, i32) {
    %c0_i32 = arith.constant 0 : i32
    %c0_i32_0 = arith.constant 0 : i32
    %c0_i32_1 = arith.constant 0 : i32
    return %c0_i32, %c0_i32_0 : i32, i32
  }
  func.func @transform_11(%arg0: i32) -> (i32, i32) {
    %c0_i32 = arith.constant 0 : i32
    %c0_i32_0 = arith.constant 0 : i32
    %c0_i32_1 = arith.constant 0 : i32
    return %c0_i32, %c0_i32_0 : i32, i32
  }
  func.func @transform_12(%arg0: i32) -> (i32, i32, i32) {
    %c0_i32 = arith.constant 0 : i32
    %c0_i32_0 = arith.constant 0 : i32
    %c0_i32_1 = arith.constant 0 : i32
    %c0_i32_2 = arith.constant 0 : i32
    return %c0_i32, %c0_i32_0, %c0_i32_1 : i32, i32, i32
  }
  func.func @transform_13(%arg0: i32) -> i32 {
    %c0_i32 = arith.constant 0 : i32
    %c0_i32_0 = arith.constant 0 : i32
    return %c0_i32 : i32
  }
  func.func @transform_14(%arg0: i32) -> (i32, i32, i32) {
    %c0_i32 = arith.constant 0 : i32
    %c0_i32_0 = arith.constant 0 : i32
    %c0_i32_1 = arith.constant 0 : i32
    return %arg0, %c0_i32, %c0_i32_0 : i32, i32, i32
  }
}

</mosaic_0001>

<bundles_post_ra>
// kernel: basic_block_forward.1
= control target key start
LH: loop header
LB: loop body
LE: loop exit
PB: predicated region body
PF: predicated region fallthrough
CT: control target
= control target key end

     0   :  { %s4923_s0 = inlined_call_operand.vmem [shape: f32[2,16,256], index: 0, kind: input, shape index: {}]   ;;  %s4924_s1 = inlined_call_operand.hbm [shape: bf16[3,256,256], index: 1, kind: input, shape index: {}]   ;;  %s4925_s2 = inlined_call_operand.vmem [shape: f32[1,256], index: 2, kind: input, shape index: {}]   ;;  %s4926_s3 = inlined_call_operand.vmem [shape: f32[1,256], index: 3, kind: input, shape index: {}]   ;;  %s4927_s4 = inlined_call_operand.hbm [shape: bf16[3,256,256], index: 4, kind: input, shape index: {}]   ;;  %s4928_s5 = inlined_call_operand.vmem [shape: f32[1,256], index: 5, kind: input, shape index: {}]   ;;  %s4929_s6 = inlined_call_operand.vmem [shape: f32[1,256], index: 6, kind: input, shape index: {}]   ;;  %s4930_s7 = inlined_call_operand.vmem [shape: f32[16,4], index: 7, kind: input, shape index: {}]   ;;  %s4931_s8 = inlined_call_operand.vmem [shape: f32[1,4], index: 8, kind: input, shape index: {}]   ;;  %s4932_s9 = inlined_call_operand.vmem [shape: f32[4,256], index: 9, kind: input, shape index: {}]   ;;  %s4933_s10 = inlined_call_operand.vmem [shape: f32[1,256], index: 10, kind: input, shape index: {}]   ;;  %s4934_s11 = inlined_call_operand.vmem [shape: f32[256,256], index: 11, kind: input, shape index: {}]   ;;  %s4935_s12 = inlined_call_operand.hbm [shape: bf16[7,32,256], index: 12, kind: input, shape index: {}]   ;;  %s4936_s13 = inlined_call_operand.vmem [shape: f32[2], index: 13, kind: input, shape index: {}]   ;;  %s4937_s14 = inlined_call_operand.vmem [shape: f32[2,16,256], index: 14, kind: output, shape index: {}]  }
   0x1   :  { %4939 = sst [smem:[#allocation13_spill]] %s4933_s10 }
   0x2   :  { %4940 = sst [smem:[#allocation14_spill]] %s4936_s13 }
   0x3   :  { %4941 = sst [smem:[#allocation15_spill]] %s4937_s14 }
   0x4   :  { %19 = vsyncpa [#allocation3], 0 }
   0x5   :  { %20 = vsyncpa [#allocation6], 0 }
   0x6   :  { %21 = vsyncpa [#allocation4], 0  ;;  %s4385_s29 = smov 0  }
   0x7 LB: > { %4942 = sst [smem:[#allocation12_spill]] %s4294_s29  ;;  %s4391_s30 = sadd.s32 4294967295, %s4294_s29   ;;  %s4294_s29 = sphi %s4385_s29, %s27_s29  }
   0x8   : > { %p3367_p0 = scmp.ge.s32.totalorder %s4294_s29, 1  ;;  %p357_p1 = scmp.lt.s32.totalorder %s4294_s29, 3 }
   0x9   : > { %p3768_p2 = scmp.eq.s32.totalorder %s4391_s30, 0  ;;  %s4296_s16 = smov [#allocation5]  }
   0xa   : > { %p4396_p3 = pnand %p3367_p0, %p357_p1  ;;  %s388_s17 = sshll.u32 %s4296_s16, 4  ;;  %s4400_s17 = int_to_ptr.vmem [resolvable:$true] %s388_s17 }
   0xb   : > { %s4297_s18 = smov [#allocation2]   ;;  %s4298_s21 = smov [#allocation7]  }
   0xc   : > { %p3755_p4 = pneg %p4396_p3  ;;  %s369_s19 = sshll.u32 %s4297_s18, 4  ;;  %s4404_s19 = int_to_ptr.vmem [resolvable:$true] %s369_s19 }
   0xd   : > { %s422_s22 = sshll.u32 %s4298_s21, 4  ;;  %s4945_s13 = sld [smem:[#allocation14_spill]]  ;;  %s4412_s22 = int_to_ptr.vmem [resolvable:$true] %s422_s22 }
   0xe   : > { %p4408_p5 = pnand %p3768_p2, %p3755_p4  ;;  %s4177_s28 = scalar_lea.hbm %s4927_s4, 12288 }
   0xf   : > { %p4178_p6 = scmp.ne.s32.totalorder %s4927_s4, %s4177_s28  ;;  %p4184_p10 = scmp.lt.u32.totalorder %s4177_s28, %s4927_s4 }
  0x10   : > { %p4427_p7 = pneg %p4408_p5 }
  0x12   : > { %p4180_p8 = pnand %p4427_p7, %p4178_p6 }
  0x13   : > { %s436_s25 = sshll.u32 %s4945_s13, 4  ;;  %s4417_s25 = int_to_ptr.vmem [resolvable:$true] %s436_s25 }
  0x14   : > { %p4181_p9 = pneg %p4180_p8 }
  0x16   : > { %p4186_p11 = pnand %p4184_p10, %p4181_p9 }
  0x18   : > { %4189 = shalt.err (!%p4186_p11)
}
  0x19   : > { %s4190_s24 = scalar_lea.vmem %s4400_s17, 12288  ;;  %p4198_p1 = scmp.lt.s32.totalorder %s4400_s17, %s4400_s17 }
  0x1a   : > { %p4191_p12 = scmp.ne.s32.totalorder %s4400_s17, %s4190_s24  ;;  %p4199_p4 = scmp.lt.s32.totalorder %s4190_s24, %s4190_s24 }
  0x1c   : > { %p4193_p13 = pnand %p4191_p12, %p4427_p7  ;;  %p4200_p6 = por %p4199_p4, %p4198_p1 }
  0x1e   : > { %p4194_p0 = pneg %p4193_p13 }
  0x20   : > { %p4201_p8 = pnand %p4200_p6, %p4194_p0 }
  0x22   : > { %4204 = shalt.err (!%p4201_p8)
}
  0x23   : > { %s4299_s26 = smov 128   ;;  %s4300_s27 = smov 8  }
  0x24   : > { %3761 = dma.hbm_to_vmem [thread:$0]  (!%p4408_p5), %s4927_s4, 12288, %s4400_s17, [#allocation6], %s4299_s26, %s4299_s26, %s4300_s27  }
  0x25   : > { %s4205_s23 = scalar_lea.hbm %s4924_s1, 12288 }
  0x26   : > { %p4206_p9 = scmp.ne.s32.totalorder %s4924_s1, %s4205_s23  ;;  %p4212_p12 = scmp.lt.u32.totalorder %s4205_s23, %s4924_s1 }
  0x28   : > { %p4208_p10 = pnand %p4206_p9, %p4427_p7 }
  0x2a   : > { %p4209_p11 = pneg %p4208_p10 }
  0x2c   : > { %p4214_p13 = pnand %p4212_p12, %p4209_p11 }
  0x2e   : > { %4217 = shalt.err (!%p4214_p13)
}
  0x2f   : > { %s4218_s17 = scalar_lea.vmem %s4404_s19, 12288  ;;  %p4226_p6 = scmp.lt.s32.totalorder %s4404_s19, %s4404_s19 }
  0x30   : > { %p4219_p0 = scmp.ne.s32.totalorder %s4404_s19, %s4218_s17  ;;  %p4227_p8 = scmp.lt.s32.totalorder %s4218_s17, %s4218_s17 }
  0x32   : > { %p4221_p1 = pnand %p4219_p0, %p4427_p7  ;;  %p4228_p9 = por %p4227_p8, %p4226_p6 }
  0x34   : > { %p4222_p4 = pneg %p4221_p1 }
  0x36   : > { %p4229_p10 = pnand %p4228_p9, %p4222_p4 }
  0x38   : > { %4232 = shalt.err (!%p4229_p10)
}
  0x39   : > { %3758 = dma.hbm_to_vmem [thread:$0]  (!%p4408_p5), %s4924_s1, 12288, %s4404_s19, [#allocation3], %s4299_s26, %s4299_s26, %s4300_s27  }
  0x3a   : > { %s4233_s16 = scalar_lea.hbm %s4935_s12, 3584 }
  0x3b   : > { %p4234_p11 = scmp.ne.s32.totalorder %s4935_s12, %s4233_s16  ;;  %p4240_p0 = scmp.lt.u32.totalorder %s4233_s16, %s4935_s12 }
  0x3d   : > { %p4236_p12 = pnand %p4234_p11, %p4427_p7 }
  0x3f   : > { %p4237_p13 = pneg %p4236_p12 }
  0x41   : > { %p4242_p1 = pnand %p4240_p0, %p4237_p13 }
  0x43   : > { %4245 = shalt.err (!%p4242_p1)
}
  0x44   : > { %s4246_s19 = scalar_lea.vmem %s4412_s22, 3584  ;;  %p4254_p9 = scmp.lt.s32.totalorder %s4412_s22, %s4412_s22 }
  0x45   : > { %p4247_p4 = scmp.ne.s32.totalorder %s4412_s22, %s4246_s19  ;;  %p4255_p10 = scmp.lt.s32.totalorder %s4246_s19, %s4246_s19 }
  0x47   : > { %p4249_p6 = pnand %p4247_p4, %p4427_p7  ;;  %p4256_p11 = por %p4255_p10, %p4254_p9 }
  0x49   : > { %p4250_p8 = pneg %p4249_p6 }
  0x4b   : > { %p4257_p12 = pnand %p4256_p11, %p4250_p8 }
  0x4d   : > { %4260 = shalt.err (!%p4257_p12)
}
  0x4e   : > { %3764 = dma.hbm_to_vmem [thread:$0]  (!%p4408_p5), %s4935_s12, 3584, %s4412_s22, [#allocation6], %s4299_s26, %s4299_s26, %s4300_s27  }
  0x4f   : > { %s4261_s13 = scalar_lea.vmem %s4417_s25, 16  ;;  %p4269_p4 = scmp.lt.s32.totalorder %s4417_s25, %s4417_s25 }
  0x50   : > { %p4262_p13 = scmp.ne.s32.totalorder %s4417_s25, %s4261_s13  ;;  %p4270_p6 = scmp.lt.s32.totalorder %s4261_s13, %s4261_s13 }
  0x52   : > { %p4264_p0 = pnand %p4262_p13, %p4427_p7  ;;  %p4271_p8 = por %p4270_p6, %p4269_p4 }
  0x54   : > { %p4265_p1 = pneg %p4264_p0 }
  0x56   : > { %p4272_p9 = pnand %p4271_p8, %p4265_p1 }
  0x58   : > { %4275 = shalt.err (!%p4272_p9)
}
  0x59   : > { %s4301_s14 = smov [#allocation8]   ;;  %457 = sbr.rel (%p4396_p3) target bundleno = 2610 (0xa32), region = 76 }
  0x5a   : > { %3767 = dma.vmem_to_smem (!%p4408_p5), %s4417_s25, 16, %s4301_s14, [#allocation4]  }
  0x60   : > { %4281 = dma.done.wait (%p3768_p2), [#allocation3], 12288  }
  0x61   : > { %4283 = vsyncadd (%p3768_p2), [#allocation3], 4294955008 }
  0x62   : > { %4285 = dma.done.wait (%p3768_p2), [#allocation6], 15872  }
  0x63   : > { %4287 = vsyncadd (%p3768_p2), [#allocation6], 4294951424 }
  0x64   : > { %4289 = dma.done.wait (%p3768_p2), [#allocation4], 16  }
  0x65   : > { %4291 = vsyncadd (%p3768_p2), [#allocation4], 4294967280 }
  0x66   : > { %475 = sfence }
  0x67   : > { %v3818_v0 = vld [vmem:[#allocation2 + $0x4] ss:$8 sps:$4 sm:$0xff]   ;;  %v3820_v1 = vld [vmem:[#allocation2] ss:$8 sps:$4 sm:$0xff]   ;;  %v3821_v2 = vld [vmem:[#allocation2 + $0x14] ss:$8 sps:$4 sm:$0xff]  }
  0x68   : > { %725 = vmatprep.subr.bf16.mxu0 %v3818_v0  ;;  %v3823_v3 = vld [vmem:[#allocation2 + $0x10] ss:$8 sps:$4 sm:$0xff]   ;;  %v3824_v4 = vld [vmem:[#allocation2 + $0x24] ss:$8 sps:$4 sm:$0xff]   ;;  %v3826_v5 = vld [vmem:[#allocation2 + $0x20] ss:$8 sps:$4 sm:$0xff]  }
  0x69   : > { %726 = vmatpush1.bf16.msra.mxu0 %v3820_v1  ;;  %v3827_v6 = vld [vmem:[#allocation2 + $0x34] ss:$8 sps:$4 sm:$0xff]   ;;  %p516_p3 = scmp.lt.s32.totalorder %s4391_s30, 1  ;;  %v3829_v7 = vld [vmem:[#allocation2 + $0x30] ss:$8 sps:$4 sm:$0xff]   ;;  %vm1041_vm0 = vcmask 1040384  }
  0x6a   : > { %727 = vmatprep.subr.bf16.mxu0 %v3821_v2  ;;  %v3830_v8 = vld [vmem:[#allocation2 + $0x44] ss:$8 sps:$4 sm:$0xff]   ;;  %v3832_v9 = vld [vmem:[#allocation2 + $0x40] ss:$8 sps:$4 sm:$0xff]   ;;  %v3833_v10 = vld [vmem:[#allocation2 + $0x54] ss:$8 sps:$4 sm:$0xff]  }
  0x6b   : > { %s4951_s30 = smov (!%p516_p3, %s4391_s30), 1  ;;  %v3835_v11 = vld [vmem:[#allocation2 + $0x50] ss:$8 sps:$4 sm:$0xff]   ;;  %v3836_v12 = vld [vmem:[#allocation2 + $0x64] ss:$8 sps:$4 sm:$0xff]   ;;  %vm1261_vm1 = vcmask 1046528  }
  0x6c   : > { %s3623_s29 = sshll.u32 %s4951_s30, 5  ;;  %v3865_v13 = vld [vmem:[#allocation2 + $0x204] ss:$8 sps:$4 sm:$0xff]   ;;  %v3868_v14 = vld [vmem:[#allocation2 + $0x200] ss:$8 sps:$4 sm:$0xff]   ;;  %s4302_s24 = smov 64  }
  0x6d   : > { %728 = vmatpush1.bf16.msra.mxu0 %v3823_v3  ;;  %s4536_s22 = scalar_lea.vmem %s4923_s0, %s3623_s29  ;;  %v3838_v16 = vld [vmem:[#allocation2 + $0x60] ss:$8 sps:$4 sm:$0xff]   ;;  %v3839_v17 = vld [vmem:[#allocation2 + $0x74] ss:$8 sps:$4 sm:$0xff]   ;;  %994 = vmatprep.subr.bf16.mxu1 %v3865_v13  ;;  %v3841_v21 = vld [vmem:[#allocation2 + $0x70] ss:$8 sps:$4 sm:$0xff]  }
  0x6e   : > { %729 = vmatprep.subr.bf16.mxu0 %v3824_v4  ;;  %v528_v15 = vld [vmem:[%s4536_s22 + $0x8] sm:$0xff]  ;;  %v530_v18 = vld [vmem:[%s4536_s22 + $0x18] sm:$0xff]  ;;  %995 = vmatpush1.bf16.msra.mxu1 %v3868_v14  ;;  %v527_v56 = vld [vmem:[%s4536_s22] sm:$0xff]  ;;  %s4304_s14 = smov 96   ;;  %vm4305_vm2 = vmmov 0   ;;  %s4307_s15 = smov 112  }
  0x6f   : > { %v4540_v19 = vpack.c.bf16 %v530_v18, %v528_v15  ;;  %v3869_v20 = vld [vmem:[#allocation2 + $0x214] ss:$8 sps:$4 sm:$0xff]   ;;  %v3874_v22 = vld [vmem:[#allocation2 + $0x210] ss:$8 sps:$4 sm:$0xff]   ;;  %v3875_v23 = vld [vmem:[#allocation2 + $0x224] ss:$8 sps:$4 sm:$0xff]  }
  0x70   : > { %996 = vmatprep.subr.bf16.mxu1 %v3869_v20  ;;  %v3842_v24 = vld [vmem:[#allocation2 + $0x84] ss:$8 sps:$4 sm:$0xff]   ;;  %v3880_v25 = vld [vmem:[#allocation2 + $0x220] ss:$8 sps:$4 sm:$0xff]   ;;  %v3881_v26 = vld [vmem:[#allocation2 + $0x234] ss:$8 sps:$4 sm:$0xff]  }
  0x71   : > { %730 = vmatpush1.bf16.msra.mxu0 %v3826_v5  ;;  %757 = vmatprep.mubr.bf16.mxu0 %v4540_v19  ;;  %v3844_v27 = vld [vmem:[#allocation2 + $0x80] ss:$8 sps:$4 sm:$0xff]   ;;  %v3845_v28 = vld [vmem:[#allocation2 + $0x94] ss:$8 sps:$4 sm:$0xff]   ;;  %v3886_v29 = vld [vmem:[#allocation2 + $0x230] ss:$8 sps:$4 sm:$0xff]  }
  0x72   : > { %731 = vmatprep.subr.bf16.mxu0 %v3827_v6  ;;  %1026 = vmatprep.mubr.bf16.mxu1 %v4540_v19  ;;  %v3887_v30 = vld [vmem:[#allocation2 + $0x244] ss:$8 sps:$4 sm:$0xff]   ;;  %v3847_v31 = vld [vmem:[#allocation2 + $0x90] ss:$8 sps:$4 sm:$0xff]   ;;  %v3892_v33 = vld [vmem:[#allocation2 + $0x240] ss:$8 sps:$4 sm:$0xff]  }
  0x73   : > { %997 = vmatpush1.bf16.msra.mxu1 %v3874_v22  ;;  %v3848_v32 = vld [vmem:[#allocation2 + $0xa4] ss:$8 sps:$4 sm:$0xff]   ;;  %v3893_v34 = vld [vmem:[#allocation2 + $0x254] ss:$8 sps:$4 sm:$0xff]   ;;  %v3850_v35 = vld [vmem:[#allocation2 + $0xa0] ss:$8 sps:$4 sm:$0xff]  }
  0x74   : > { %998 = vmatprep.subr.bf16.mxu1 %v3875_v23  ;;  %v3851_v36 = vld [vmem:[#allocation2 + $0xb4] ss:$8 sps:$4 sm:$0xff]   ;;  %v3898_v37 = vld [vmem:[#allocation2 + $0x250] ss:$8 sps:$4 sm:$0xff]   ;;  %v3899_v38 = vld [vmem:[#allocation2 + $0x264] ss:$8 sps:$4 sm:$0xff]  }
  0x75   : > { %732 = vmatpush1.bf16.msra.mxu0 %v3829_v7  ;;  %v3853_v39 = vld [vmem:[#allocation2 + $0xb0] ss:$8 sps:$4 sm:$0xff]   ;;  %v3854_v40 = vld [vmem:[#allocation2 + $0xc4] ss:$8 sps:$4 sm:$0xff]   ;;  %v3904_v41 = vld [vmem:[#allocation2 + $0x260] ss:$8 sps:$4 sm:$0xff]  }
  0x76   : > { %733 = vmatprep.subr.bf16.mxu0 %v3830_v8  ;;  %v3905_v42 = vld [vmem:[#allocation2 + $0x274] ss:$8 sps:$4 sm:$0xff]   ;;  %v3856_v43 = vld [vmem:[#allocation2 + $0xc0] ss:$8 sps:$4 sm:$0xff]   ;;  %v3910_v45 = vld [vmem:[#allocation2 + $0x270] ss:$8 sps:$4 sm:$0xff]  }
  0x77   : > { %999 = vmatpush1.bf16.msra.mxu1 %v3880_v25  ;;  %v3857_v44 = vld [vmem:[#allocation2 + $0xd4] ss:$8 sps:$4 sm:$0xff]   ;;  %v3911_v46 = vld [vmem:[#allocation2 + $0x284] ss:$8 sps:$4 sm:$0xff]   ;;  %v3859_v47 = vld [vmem:[#allocation2 + $0xd0] ss:$8 sps:$4 sm:$0xff]  }
  0x78   : > { %1000 = vmatprep.subr.bf16.mxu1 %v3881_v26  ;;  %v3860_v48 = vld [vmem:[#allocation2 + $0xe4] ss:$8 sps:$4 sm:$0xff]   ;;  %v3916_v49 = vld [vmem:[#allocation2 + $0x280] ss:$8 sps:$4 sm:$0xff]   ;;  %v3917_v50 = vld [vmem:[#allocation2 + $0x294] ss:$8 sps:$4 sm:$0xff]  }
  0x79   : > { %734 = vmatpush1.bf16.msra.mxu0 %v3832_v9  ;;  %v3862_v51 = vld [vmem:[#allocation2 + $0xe0] ss:$8 sps:$4 sm:$0xff]   ;;  %v3863_v52 = vld [vmem:[#allocation2 + $0xf4] ss:$8 sps:$4 sm:$0xff]   ;;  %v3922_v53 = vld [vmem:[#allocation2 + $0x290] ss:$8 sps:$4 sm:$0xff]  }
  0x7a   : > { %735 = vmatprep.subr.bf16.mxu0 %v3833_v10  ;;  %v3923_v54 = vld [vmem:[#allocation2 + $0x2a4] ss:$8 sps:$4 sm:$0xff]   ;;  %v3867_v55 = vld [vmem:[#allocation2 + $0xf0] ss:$8 sps:$4 sm:$0xff]   ;;  %v3928_v59 = vld [vmem:[#allocation2 + $0x2a0] ss:$8 sps:$4 sm:$0xff]  }
  0x7b   : > { %1001 = vmatpush1.bf16.msra.mxu1 %v3886_v29  ;;  %v529_v57 = vld [vmem:[%s4536_s22 + $0x10] sm:$0xff]  ;;  %v3873_v58 = vld [vmem:[#allocation2 + $0x104] ss:$8 sps:$4 sm:$0xff]   ;;  %v3871_v62 = vld [vmem:[#allocation2 + $0x100] ss:$8 sps:$4 sm:$0xff]   ;;  %vm2159_vm3 = vcmask 130048  }
  0x7c   : > { %1002 = vmatprep.subr.bf16.mxu1 %v3887_v30  ;;  %v3929_v60 = vld [vmem:[#allocation2 + $0x2b4] ss:$8 sps:$4 sm:$0xff]   ;;  %v4546_v61 = vpack.c.bf16 %v529_v57, %v527_v56  ;;  %v3934_v0 = vld [vmem:[#allocation2 + $0x2b0] ss:$8 sps:$4 sm:$0xff]   ;;  %v3935_v2 = vld [vmem:[#allocation2 + $0x2c4] ss:$8 sps:$4 sm:$0xff]  }
  0x7d   : > { %736 = vmatpush1.bf16.msra.mxu0 %v3835_v11  ;;  %v3879_v63 = vld [vmem:[#allocation2 + $0x114] ss:$8 sps:$4 sm:$0xff]   ;;  %v3877_v1 = vld [vmem:[#allocation2 + $0x110] ss:$8 sps:$4 sm:$0xff]   ;;  %v3885_v3 = vld [vmem:[#allocation2 + $0x124] ss:$8 sps:$4 sm:$0xff]  }
  0x7e   : > { %737 = vmatprep.subr.bf16.mxu0 %v3836_v12  ;;  %v3940_v4 = vld [vmem:[#allocation2 + $0x2c0] ss:$8 sps:$4 sm:$0xff]   ;;  %v3941_v5 = vld [vmem:[#allocation2 + $0x2d4] ss:$8 sps:$4 sm:$0xff]   ;;  %v3946_v8 = vld [vmem:[#allocation2 + $0x2d0] ss:$8 sps:$4 sm:$0xff]  }
  0x7f   : > { %1003 = vmatpush1.bf16.msra.mxu1 %v3892_v33  ;;  %v3883_v6 = vld [vmem:[#allocation2 + $0x120] ss:$8 sps:$4 sm:$0xff]   ;;  %v3891_v7 = vld [vmem:[#allocation2 + $0x134] ss:$8 sps:$4 sm:$0xff]   ;;  %v3947_v9 = vld [vmem:[#allocation2 + $0x2e4] ss:$8 sps:$4 sm:$0xff]  }
  0x80   : > { %1004 = vmatprep.subr.bf16.mxu1 %v3893_v34  ;;  %v3889_v10 = vld [vmem:[#allocation2 + $0x130] ss:$8 sps:$4 sm:$0xff]   ;;  %v3897_v11 = vld [vmem:[#allocation2 + $0x144] ss:$8 sps:$4 sm:$0xff]   ;;  %v3952_v12 = vld [vmem:[#allocation2 + $0x2e0] ss:$8 sps:$4 sm:$0xff]  }
  0x81   : > { %738 = vmatpush1.bf16.msra.mxu0 %v3838_v16  ;;  %v3953_v13 = vld [vmem:[#allocation2 + $0x2f4] ss:$8 sps:$4 sm:$0xff]   ;;  %v3895_v14 = vld [vmem:[#allocation2 + $0x140] ss:$8 sps:$4 sm:$0xff]   ;;  %v3958_v16 = vld [vmem:[#allocation2 + $0x2f0] ss:$8 sps:$4 sm:$0xff]  }
  0x82   : > { %739 = vmatprep.subr.bf16.mxu0 %v3839_v17  ;;  %v3903_v15 = vld [vmem:[#allocation2 + $0x154] ss:$8 sps:$4 sm:$0xff]   ;;  %v3901_v17 = vld [vmem:[#allocation2 + $0x150] ss:$8 sps:$4 sm:$0xff]   ;;  %v3909_v18 = vld [vmem:[#allocation2 + $0x164] ss:$8 sps:$4 sm:$0xff]  }
  0x83   : > { %1005 = vmatpush1.bf16.msra.mxu1 %v3898_v37  ;;  %v3915_v20 = vld [vmem:[#allocation2 + $0x174] ss:$8 sps:$4 sm:$0xff]   ;;  %v3921_v22 = vld [vmem:[#allocation2 + $0x184] ss:$8 sps:$4 sm:$0xff]   ;;  %v3919_v23 = vld [vmem:[#allocation2 + $0x180] ss:$8 sps:$4 sm:$0xff]  }
  0x84   : > { %1006 = vmatprep.subr.bf16.mxu1 %v3899_v38  ;;  %v3925_v25 = vld [vmem:[#allocation2 + $0x190] ss:$8 sps:$4 sm:$0xff]   ;;  %v3933_v26 = vld [vmem:[#allocation2 + $0x1a4] ss:$8 sps:$4 sm:$0xff]   ;;  %v3962_v38 = vld [vmem:[#allocation5] ss:$8 sps:$4 sm:$0xff]  }
  0x85   : > { %740 = vmatpush1.bf16.msra.mxu0 %v3841_v21  ;;  %v3913_v21 = vld [vmem:[#allocation2 + $0x170] ss:$8 sps:$4 sm:$0xff]   ;;  %v3945_v30 = vld [vmem:[#allocation2 + $0x1c4] ss:$8 sps:$4 sm:$0xff]   ;;  %v3986_v56 = vld [vmem:[#allocation5 + $0x40] ss:$8 sps:$4 sm:$0xff]  }
  0x86   : > { %741 = vmatprep.subr.bf16.mxu0 %v3842_v24  ;;  %v3927_v24 = vld [vmem:[#allocation2 + $0x194] ss:$8 sps:$4 sm:$0xff]   ;;  %v3937_v29 = vld [vmem:[#allocation2 + $0x1b0] ss:$8 sps:$4 sm:$0xff]   ;;  %v3957_v34 = vld [vmem:[#allocation2 + $0x1e4] ss:$8 sps:$4 sm:$0xff]  }
  0x87   : > { %1007 = vmatpush1.bf16.msra.mxu1 %v3904_v41  ;;  %v3949_v33 = vld [vmem:[#allocation2 + $0x1d0] ss:$8 sps:$4 sm:$0xff]   ;;  %v3967_v41 = vld [vmem:[#allocation5 + $0x204] ss:$8 sps:$4 sm:$0xff]   ;;  %v3989_v57 = vld [vmem:[#allocation5 + $0x240] ss:$8 sps:$4 sm:$0xff]  }
  0x88   : > { %1008 = vmatprep.subr.bf16.mxu1 %v3905_v42  ;;  %v3959_v37 = vld [vmem:[#allocation2 + $0x1f0] ss:$8 sps:$4 sm:$0xff]   ;;  %v3970_v42 = vld [vmem:[#allocation5 + $0x14] ss:$8 sps:$4 sm:$0xff]   ;;  %vm2328_vm4 = vcmask 1043456   ;;  %vm2324_vm5 = vcmask 31744  }
  0x89   : > { %742 = vmatpush1.bf16.msra.mxu0 %v3844_v27  ;;  %v3931_v27 = vld [vmem:[#allocation2 + $0x1a0] ss:$8 sps:$4 sm:$0xff]   ;;  %s4947_s21 = sld [smem:[#allocation13_spill]]  ;;  %vm2647_vm6 = vcmask 1042432   ;;  %vm2667_vm7 = vsmask.f32 7424 }
  0x8a   : > { %743 = vmatprep.subr.bf16.mxu0 %v3845_v28  ;;  %v3939_v28 = vld [vmem:[#allocation2 + $0x1b4] ss:$8 sps:$4 sm:$0xff]   ;;  %vm2700_vm8 = vcmask 261120   ;;  %vm3145_vm9 = vcmask 1044480   ;;  %vm2898_vm10 = vsmask.f32 6400 }
  0x8b   : > { %1009 = vmatpush1.bf16.msra.mxu1 %v3910_v45  ;;  %v3971_v45 = vld [vmem:[#allocation5 + $0x210] ss:$8 sps:$4 sm:$0xff]   ;;  %vm2983_vm11 = vcmask 1045504   ;;  %vm3062_vm12 = vsmask.f32 5376  ;;  %s4948_s17 = sld [smem:[#allocation15_spill]] }
  0x8c   : > { %1010 = vmatprep.subr.bf16.mxu1 %v3911_v46  ;;  %v3976_v46 = vld [vmem:[#allocation5 + $0x24] ss:$8 sps:$4 sm:$0xff]  }
  0x8d   : > { %744 = vmatpush1.bf16.msra.mxu0 %v3847_v31  ;;  %v3943_v31 = vld [vmem:[#allocation2 + $0x1c0] ss:$8 sps:$4 sm:$0xff]  }
  0x8e   : > { %745 = vmatprep.subr.bf16.mxu0 %v3848_v32  ;;  %v3951_v32 = vld [vmem:[#allocation2 + $0x1d4] ss:$8 sps:$4 sm:$0xff]  }
  0x8f   : > { %1011 = vmatpush1.bf16.msra.mxu1 %v3916_v49  ;;  %v3977_v49 = vld [vmem:[#allocation5 + $0x220] ss:$8 sps:$4 sm:$0xff]  }
  0x90   : > { %1012 = vmatprep.subr.bf16.mxu1 %v3917_v50  ;;  %v3982_v50 = vld [vmem:[#allocation5 + $0x34] ss:$8 sps:$4 sm:$0xff]  }
  0x91   : > { %746 = vmatpush1.bf16.msra.mxu0 %v3850_v35  ;;  %v3955_v35 = vld [vmem:[#allocation2 + $0x1e0] ss:$8 sps:$4 sm:$0xff]   ;;  %s525_s10 = scalar_lea.vmem %s4948_s17, %s3623_s29 }
  0x92   : > { %747 = vmatprep.subr.bf16.mxu0 %v3851_v36  ;;  %v3961_v36 = vld [vmem:[#allocation2 + $0x1f4] ss:$8 sps:$4 sm:$0xff]  }
  0x93   : > { %1013 = vmatpush1.bf16.msra.mxu1 %v3922_v53  ;;  %v3983_v53 = vld [vmem:[#allocation5 + $0x230] ss:$8 sps:$4 sm:$0xff]  }
  0x94   : > { %1014 = vmatprep.subr.bf16.mxu1 %v3923_v54  ;;  %v3988_v54 = vld [vmem:[#allocation5 + $0x44] ss:$8 sps:$4 sm:$0xff]  }
  0x95   : > { %748 = vmatpush1.bf16.msra.mxu0 %v3853_v39  ;;  %v3964_v39 = vld [vmem:[#allocation5 + $0x4] ss:$8 sps:$4 sm:$0xff]  }
  0x96   : > { %749 = vmatprep.subr.bf16.mxu0 %v3854_v40  ;;  %v3965_v40 = vld [vmem:[#allocation5 + $0x200] ss:$8 sps:$4 sm:$0xff]  }
  0x97   : > { %1015 = vmatpush1.bf16.msra.mxu1 %v3928_v59  ;;  %v3997_v59 = vld [vmem:[#allocation5 + $0x254] ss:$8 sps:$4 sm:$0xff]  }
  0x98   : > { %1016 = vmatprep.subr.bf16.mxu1 %v3929_v60  ;;  %v3992_v60 = vld [vmem:[#allocation5 + $0x50] ss:$8 sps:$4 sm:$0xff]  }
  0x99   : > { %750 = vmatpush1.bf16.msra.mxu0 %v3856_v43  ;;  %v3973_v43 = vld [vmem:[#allocation5 + $0x214] ss:$8 sps:$4 sm:$0xff]  }
  0x9a   : > { %751 = vmatprep.subr.bf16.mxu0 %v3857_v44  ;;  %v3968_v44 = vld [vmem:[#allocation5 + $0x10] ss:$8 sps:$4 sm:$0xff]  }
  0x9b   : > { %1017 = vmatpush1.bf16.msra.mxu1 %v3934_v0  ;;  %v3998_v0 = vld [vmem:[#allocation5 + $0x60] ss:$8 sps:$4 sm:$0xff]  }
  0x9c   : > { %1018 = vmatprep.subr.bf16.mxu1 %v3935_v2  ;;  %v4006_v2 = vld [vmem:[#allocation5 + $0x74] ss:$8 sps:$4 sm:$0xff]  }
  0x9d   : > { %752 = vmatpush1.bf16.msra.mxu0 %v3859_v47  ;;  %v3979_v47 = vld [vmem:[#allocation5 + $0x224] ss:$8 sps:$4 sm:$0xff]  }
  0x9e   : > { %753 = vmatprep.subr.bf16.mxu0 %v3860_v48  ;;  %v3974_v48 = vld [vmem:[#allocation5 + $0x20] ss:$8 sps:$4 sm:$0xff]  }
  0x9f   : > { %1019 = vmatpush1.bf16.msra.mxu1 %v3940_v4  ;;  %v4004_v4 = vld [vmem:[#allocation5 + $0x70] ss:$8 sps:$4 sm:$0xff]  }
  0xa0   : > { %1020 = vmatprep.subr.bf16.mxu1 %v3941_v5  ;;  %v4007_v5 = vld [vmem:[#allocation5 + $0x270] ss:$8 sps:$4 sm:$0xff]  }
  0xa1   : > { %754 = vmatpush1.bf16.msra.mxu0 %v3862_v51  ;;  %v3985_v51 = vld [vmem:[#allocation5 + $0x234] ss:$8 sps:$4 sm:$0xff]  }
  0xa2   : > { %755 = vmatprep.subr.bf16.mxu0 %v3863_v52  ;;  %v3980_v52 = vld [vmem:[#allocation5 + $0x30] ss:$8 sps:$4 sm:$0xff]  }
  0xa3   : > { %1021 = vmatpush1.bf16.msra.mxu1 %v3946_v8  ;;  %v4010_v8 = vld [vmem:[#allocation5 + $0x80] ss:$8 sps:$4 sm:$0xff]  }
  0xa4   : > { %1022 = vmatprep.subr.bf16.mxu1 %v3947_v9  ;;  %v4013_v9 = vld [vmem:[#allocation5 + $0x280] ss:$8 sps:$4 sm:$0xff]  }
  0xa5   : > { %756 = vmatpush1.bf16.msra.mxu0 %v3867_v55  ;;  %v3991_v55 = vld [vmem:[#allocation5 + $0x244] ss:$8 sps:$4 sm:$0xff]  }
  0xa6   : > { %1214 = vmatprep.subr.bf16.mxu0 %v3873_v58  ;;  %v3994_v58 = vld [vmem:[#allocation5 + $0x54] ss:$8 sps:$4 sm:$0xff]  }
  0xa7   : > { %1023 = vmatpush1.bf16.msra.mxu1 %v3952_v12  ;;  %v4016_v12 = vld [vmem:[#allocation5 + $0x90] ss:$8 sps:$4 sm:$0xff]  }
  0xa8   : > { %758 = vmatmul.mubr.bf16.vlgmr.msra.gmra.mrb[0].mxu0 %v4546_v61  ;;  %1024 = vmatprep.subr.bf16.mxu1 %v3953_v13  ;;  %v4019_v13 = vld [vmem:[#allocation5 + $0x290] ss:$8 sps:$4 sm:$0xff]  }
  0xa9   : > { %1215 = vmatpush1.bf16.msra.mxu0 %v3871_v62  ;;  %1246 = vmatprep.mubr.bf16.mxu0 %v4540_v19  ;;  %v3907_v19 = vld [vmem:[#allocation2 + $0x160] ss:$8 sps:$4 sm:$0xff]   ;;  %v4000_v62 = vld [vmem:[#allocation5 + $0x64] ss:$8 sps:$4 sm:$0xff]  }
  0xaa   : > { %1216 = vmatprep.subr.bf16.mxu0 %v3879_v63  ;;  %v4003_v63 = vld [vmem:[#allocation5 + $0x264] ss:$8 sps:$4 sm:$0xff]  }
  0xab   : > { %1025 = vmatpush1.bf16.msra.mxu1 %v3958_v16  ;;  %v4022_v16 = vld [vmem:[#allocation5 + $0xa0] ss:$8 sps:$4 sm:$0xff]  }
  0xac   : > { %1508 = vmatprep.subr.bf16.mxu1 %v3964_v39 }
  0xad   : > { %1217 = vmatpush1.bf16.msra.mxu0 %v3877_v1  ;;  %v4001_v1 = vld [vmem:[#allocation5 + $0x260] ss:$8 sps:$4 sm:$0xff]  }
  0xae   : > { %1218 = vmatprep.subr.bf16.mxu0 %v3885_v3  ;;  %1027 = vmatmul.mubr.bf16.vlgmr.msra.gmra.mrb[0].mxu1 %v4546_v61  ;;  %v4009_v3 = vld [vmem:[#allocation5 + $0x274] ss:$8 sps:$4 sm:$0xff]  }
  0xaf   : > { %1509 = vmatpush1.bf16.msra.mxu1 %v3962_v38  ;;  %v4060_v38 = vld [vmem:[#allocation5 + $0x104] ss:$8 sps:$4 sm:$0xff]  }
  0xb0   : > { %1510 = vmatprep.subr.bf16.mxu1 %v3970_v42 }
  0xb1   : > { %1219 = vmatpush1.bf16.msra.mxu0 %v3883_v6  ;;  %v4012_v6 = vld [vmem:[#allocation5 + $0x84] ss:$8 sps:$4 sm:$0xff]  }
  0xb2   : > { %1220 = vmatprep.subr.bf16.mxu0 %v3891_v7  ;;  %v4015_v7 = vld [vmem:[#allocation5 + $0x284] ss:$8 sps:$4 sm:$0xff]  }
  0xb3   : > { %1511 = vmatpush1.bf16.msra.mxu1 %v3968_v44 }
  0xb4   : > { %1512 = vmatprep.subr.bf16.mxu1 %v3976_v46 }
  0xb5   : > { %1221 = vmatpush1.bf16.msra.mxu0 %v3889_v10  ;;  %v4018_v10 = vld [vmem:[#allocation5 + $0x94] ss:$8 sps:$4 sm:$0xff]  }
  0xb6   : > { %1222 = vmatprep.subr.bf16.mxu0 %v3897_v11  ;;  %v4021_v11 = vld [vmem:[#allocation5 + $0x294] ss:$8 sps:$4 sm:$0xff]  }
  0xb7   : > { %1513 = vmatpush1.bf16.msra.mxu1 %v3974_v48 }
  0xb8   : > { %1514 = vmatprep.subr.bf16.mxu1 %v3982_v50 }
  0xb9   : > { %1223 = vmatpush1.bf16.msra.mxu0 %v3895_v14  ;;  %v4024_v14 = vld [vmem:[#allocation5 + $0xa4] ss:$8 sps:$4 sm:$0xff]  }
  0xba   : > { %1224 = vmatprep.subr.bf16.mxu0 %v3903_v15  ;;  %v4027_v15 = vld [vmem:[#allocation5 + $0x2a4] ss:$8 sps:$4 sm:$0xff]  }
  0xbb   : > { %1515 = vmatpush1.bf16.msra.mxu1 %v3980_v52 }
  0xbc   : > { %1516 = vmatprep.subr.bf16.mxu1 %v3988_v54 }
  0xbd   : > { %1225 = vmatpush1.bf16.msra.mxu0 %v3901_v17  ;;  %v4025_v17 = vld [vmem:[#allocation5 + $0x2a0] ss:$8 sps:$4 sm:$0xff]  }
  0xbe   : > { %1226 = vmatprep.subr.bf16.mxu0 %v3909_v18  ;;  %v4030_v18 = vld [vmem:[#allocation5 + $0xb4] ss:$8 sps:$4 sm:$0xff]  }
  0xbf   : > { %1517 = vmatpush1.bf16.msra.mxu1 %v3986_v56 }
  0xc0   : > { %1518 = vmatprep.subr.bf16.mxu1 %v3994_v58 }
  0xc1   : > { %1227 = vmatpush1.bf16.msra.mxu0 %v3907_v19  ;;  %v4033_v19 = vld [vmem:[#allocation5 + $0x2b4] ss:$8 sps:$4 sm:$0xff]  }
  0xc2   : > { %1228 = vmatprep.subr.bf16.mxu0 %v3915_v20  ;;  %v4028_v20 = vld [vmem:[#allocation5 + $0xb0] ss:$8 sps:$4 sm:$0xff]  }
  0xc3   : > { %1519 = vmatpush1.bf16.msra.mxu1 %v3992_v60 }
  0xc4   : > { %1520 = vmatprep.subr.bf16.mxu1 %v4000_v62  ;;  %v1278_v62 = vld [vmem:[%s4925_s2] sm:$0x3] }
  0xc5   : > { %1229 = vmatpush1.bf16.msra.mxu0 %v3913_v21  ;;  %v4031_v21 = vld [vmem:[#allocation5 + $0x2b0] ss:$8 sps:$4 sm:$0xff]  }
  0xc6   : > { %1230 = vmatprep.subr.bf16.mxu0 %v3921_v22  ;;  %v4036_v22 = vld [vmem:[#allocation5 + $0xc4] ss:$8 sps:$4 sm:$0xff]  }
  0xc7   : > { %1521 = vmatpush1.bf16.msra.mxu1 %v3998_v0 }
  0xc8   : > { %1522 = vmatprep.subr.bf16.mxu1 %v4006_v2  ;;  %v1294_v2 = vld [vmem:[%s4926_s3] sm:$0x3] }
  0xc9   : > { %1231 = vmatpush1.bf16.msra.mxu0 %v3919_v23  ;;  %v4034_v23 = vld [vmem:[#allocation5 + $0xc0] ss:$8 sps:$4 sm:$0xff]  }
  0xca   : > { %1232 = vmatprep.subr.bf16.mxu0 %v3927_v24  ;;  %v4039_v24 = vld [vmem:[#allocation5 + $0x2c4] ss:$8 sps:$4 sm:$0xff]  }
  0xcb   : > { %1523 = vmatpush1.bf16.msra.mxu1 %v4004_v4 }
  0xcc   : > { %1524 = vmatprep.subr.bf16.mxu1 %v4012_v6 }
  0xcd   : > { %1233 = vmatpush1.bf16.msra.mxu0 %v3925_v25  ;;  %v4037_v25 = vld [vmem:[#allocation5 + $0x2c0] ss:$8 sps:$4 sm:$0xff]  }
  0xce   : > { %1234 = vmatprep.subr.bf16.mxu0 %v3933_v26  ;;  %v4042_v26 = vld [vmem:[#allocation5 + $0xd4] ss:$8 sps:$4 sm:$0xff]  }
  0xcf   : > { %1525 = vmatpush1.bf16.msra.mxu1 %v4010_v8 }
  0xd0   : > { %1526 = vmatprep.subr.bf16.mxu1 %v4018_v10 }
  0xd1   : > { %1235 = vmatpush1.bf16.msra.mxu0 %v3931_v27  ;;  %v4040_v27 = vld [vmem:[#allocation5 + $0xd0] ss:$8 sps:$4 sm:$0xff]  }
  0xd2   : > { %1236 = vmatprep.subr.bf16.mxu0 %v3939_v28  ;;  %v4045_v28 = vld [vmem:[#allocation5 + $0x2d4] ss:$8 sps:$4 sm:$0xff]  }
  0xd3   : > { %1527 = vmatpush1.bf16.msra.mxu1 %v4016_v12 }
  0xd4   : > { %1528 = vmatprep.subr.bf16.mxu1 %v4024_v14 }
  0xd5   : > { %1237 = vmatpush1.bf16.msra.mxu0 %v3937_v29  ;;  %v4043_v29 = vld [vmem:[#allocation5 + $0x2d0] ss:$8 sps:$4 sm:$0xff]  }
  0xd6   : > { %1238 = vmatprep.subr.bf16.mxu0 %v3945_v30  ;;  %v4048_v30 = vld [vmem:[#allocation5 + $0xe4] ss:$8 sps:$4 sm:$0xff]  }
  0xd7   : > { %1529 = vmatpush1.bf16.msra.mxu1 %v4022_v16 }
  0xd8   : > { %1530 = vmatprep.subr.bf16.mxu1 %v4030_v18 }
  0xd9   : > { %1239 = vmatpush1.bf16.msra.mxu0 %v3943_v31  ;;  %v4046_v31 = vld [vmem:[#allocation5 + $0xe0] ss:$8 sps:$4 sm:$0xff]  }
  0xda   : > { %1240 = vmatprep.subr.bf16.mxu0 %v3951_v32  ;;  %v4051_v32 = vld [vmem:[#allocation5 + $0x2e4] ss:$8 sps:$4 sm:$0xff]  }
  0xdb   : > { %1531 = vmatpush1.bf16.msra.mxu1 %v4028_v20 }
  0xdc   : > { %1532 = vmatprep.subr.bf16.mxu1 %v4036_v22 }
  0xdd   : > { %1241 = vmatpush1.bf16.msra.mxu0 %v3949_v33  ;;  %v4049_v33 = vld [vmem:[#allocation5 + $0x2e0] ss:$8 sps:$4 sm:$0xff]  }
  0xde   : > { %1242 = vmatprep.subr.bf16.mxu0 %v3957_v34  ;;  %v4054_v34 = vld [vmem:[#allocation5 + $0xf4] ss:$8 sps:$4 sm:$0xff]  }
  0xdf   : > { %1533 = vmatpush1.bf16.msra.mxu1 %v4034_v23 }
  0xe0   : > { %1534 = vmatprep.subr.bf16.mxu1 %v4042_v26 }
  0xe1   : > { %1243 = vmatpush1.bf16.msra.mxu0 %v3955_v35  ;;  %v4052_v35 = vld [vmem:[#allocation5 + $0xf0] ss:$8 sps:$4 sm:$0xff]  }
  0xe2   : > { %1244 = vmatprep.subr.bf16.mxu0 %v3961_v36  ;;  %v4055_v36 = vld [vmem:[#allocation5 + $0x2f0] ss:$8 sps:$4 sm:$0xff]  }
  0xe3   : > { %1535 = vmatpush1.bf16.msra.mxu1 %v4040_v27 }
  0xe4   : > { %1536 = vmatprep.subr.bf16.mxu1 %v4048_v30 }
  0xe5   : > { %1245 = vmatpush1.bf16.msra.mxu0 %v3959_v37  ;;  %v4057_v37 = vld [vmem:[#allocation5 + $0x2f4] ss:$8 sps:$4 sm:$0xff]  }
  0xe6   : > { %1777 = vmatprep.subr.bf16.mxu0 %v3967_v41 }
  0xe7   : > { %1537 = vmatpush1.bf16.msra.mxu1 %v4046_v31 }
  0xe8   : > { %1247 = vmatmul.mubr.bf16.vlgmr.msra.gmra.mrb[4].mxu0 %v4546_v61  ;;  %v3995_v61 = vld [vmem:[#allocation5 + $0x250] ss:$8 sps:$4 sm:$0xff]   ;;  %1538 = vmatprep.subr.bf16.mxu1 %v4054_v34 }
  0xe9   : > { %1778 = vmatpush1.bf16.msra.mxu0 %v3965_v40 }
  0xea   : > { %1779 = vmatprep.subr.bf16.mxu0 %v3973_v43 }
  0xeb   : > { %1539 = vmatpush1.bf16.msra.mxu1 %v4052_v35  ;;  %v4058_v35 = vld [vmem:[#allocation5 + $0x100] ss:$8 sps:$4 sm:$0xff]  }
  0xec   : > { %1996 = vmatprep.subr.bf16.mxu1 %v4060_v38  ;;  %v4066_v38 = vld [vmem:[#allocation5 + $0x124] ss:$8 sps:$4 sm:$0xff]  }
  0xed   : > { %1780 = vmatpush1.bf16.msra.mxu0 %v3971_v45 }
  0xee   : > { %1781 = vmatprep.subr.bf16.mxu0 %v3979_v47 }
  0xf1   : > { %1782 = vmatpush1.bf16.msra.mxu0 %v3977_v49 }
  0xf2   : > { %1783 = vmatprep.subr.bf16.mxu0 %v3985_v51 }
  0xf5   : > { %1784 = vmatpush1.bf16.msra.mxu0 %v3983_v53 }
  0xf6   : > { %1785 = vmatprep.subr.bf16.mxu0 %v3991_v55 }
  0xf9   : > { %1786 = vmatpush1.bf16.msra.mxu0 %v3989_v57 }
  0xfa   : > { %1787 = vmatprep.subr.bf16.mxu0 %v3997_v59  ;;  %v1280_v59 = vlaneseq }
  0xfc   : > { %v1281_v60 = vshrl.u32 %v1280_v59, 7  ;;  %v4094_v59 = vld [vmem:[#allocation5 + $0x1c0] ss:$8 sps:$4 sm:$0xff]  }
  0xfd   : > { %1788 = vmatpush1.bf16.msra.mxu0 %v3995_v61 }
  0xfe   : > { %1789 = vmatprep.subr.bf16.mxu0 %v4003_v63  ;;  %v4556_v61 = vsub.s32 0, %v1281_v60  ;;  %v4561_v63 = vsub.s32 1, %v1281_v60  ;;  %v4099_v60 = vld [vmem:[#allocation5 + $0x1d4] ss:$8 sps:$4 sm:$0xff]  }
 0x100   : > { %v1283_v4 = vrot.slane %v1278_v62, %v4556_v61  ;;  %v1287_v8 = vrot.slane %v1278_v62, %v4561_v63  ;;  %v4097_v62 = vld [vmem:[#allocation5 + $0x1d0] ss:$8 sps:$4 sm:$0xff]  }
 0x101   : > { %1790 = vmatpush1.bf16.msra.mxu0 %v4001_v1 }
 0x102   : > { %1791 = vmatprep.subr.bf16.mxu0 %v4009_v3 }
 0x105   : > { %1792 = vmatpush1.bf16.msra.mxu0 %v4007_v5 }
 0x106   : > { %1793 = vmatprep.subr.bf16.mxu0 %v4015_v7 }
 0x109   : > { %1794 = vmatpush1.bf16.msra.mxu0 %v4013_v9 }
 0x10a   : > { %1795 = vmatprep.subr.bf16.mxu0 %v4021_v11  ;;  %v1299_v11 = vrot.slane %v1294_v2, %v4556_v61 }
 0x10d   : > { %1796 = vmatpush1.bf16.msra.mxu0 %v4019_v13 }
 0x10e   : > { %1797 = vmatprep.subr.bf16.mxu0 %v4027_v15 }
 0x111   : > { %1798 = vmatpush1.bf16.msra.mxu0 %v4025_v17  ;;  %v1303_v17 = vrot.slane %v1294_v2, %v4561_v63  ;;  %v4105_v2 = vld [vmem:[#allocation5 + $0x1f4] ss:$8 sps:$4 sm:$0xff]  }
 0x112   : > { %1799 = vmatprep.subr.bf16.mxu0 %v4033_v19 }
 0x115   : > { %1800 = vmatpush1.bf16.msra.mxu0 %v4031_v21 }
 0x116   : > { %1801 = vmatprep.subr.bf16.mxu0 %v4039_v24 }
 0x119   : > { %1802 = vmatpush1.bf16.msra.mxu0 %v4037_v25 }
 0x11a   : > { %1803 = vmatprep.subr.bf16.mxu0 %v4045_v28 }
 0x11d   : > { %1804 = vmatpush1.bf16.msra.mxu0 %v4043_v29 }
 0x11e   : > { %1805 = vmatprep.subr.bf16.mxu0 %v4051_v32 }
 0x121   : > { %1806 = vmatpush1.bf16.msra.mxu0 %v4049_v33 }
 0x122   : > { %1807 = vmatprep.subr.bf16.mxu0 %v4057_v37  ;;  %v4061_v37 = vld [vmem:[#allocation5 + $0x110] ss:$8 sps:$4 sm:$0xff]  }
 0x125   : > { %1808 = vmatpush1.bf16.msra.mxu0 %v4055_v36  ;;  %v4063_v36 = vld [vmem:[#allocation5 + $0x114] ss:$8 sps:$4 sm:$0xff]  }
 0x17b   : > { %v759_v39 = vpop.f32.mrb[0].mxu0 }
 0x17c   : > { %v1042_v40 = vrot.slane %v759_v39, 7  ;;  %v761_v41 = vpop.f32.mrb[1].mxu0  ;;  %v4064_v39 = vld [vmem:[#allocation5 + $0x120] ss:$8 sps:$4 sm:$0xff]  }
 0x17d   : > { %v763_v42 = vpop.f32.mrb[2].mxu0  ;;  %v1043_v45 = vrot.slane %v761_v41, 7  ;;  %v4067_v41 = vld [vmem:[#allocation5 + $0x130] ss:$8 sps:$4 sm:$0xff]  }
 0x17e   : > { %v1044_v43 = vrot.slane %v763_v42, 7  ;;  %v765_v44 = vpop.f32.mrb[3].mxu0  ;;  %v1052_v0 = vsel %vm1041_vm0, 0.0, %v1042_v40  ;;  %v4072_v42 = vld [vmem:[#allocation5 + $0x144] ss:$8 sps:$4 sm:$0xff]  }
 0x17f   : > { %v1046_v46 = vrot.slane %v765_v44, 7  ;;  %v1053_v5 = vsel %vm1041_vm0, 0.0, %v1043_v45  ;;  %v4075_v44 = vld [vmem:[#allocation5 + $0x154] ss:$8 sps:$4 sm:$0xff]  }
 0x180   : > { %v1045_v47 = vsel %vm1041_vm0, %v1042_v40, %v1044_v43  ;;  %v4069_v40 = vld [vmem:[#allocation5 + $0x134] ss:$8 sps:$4 sm:$0xff]   ;;  %v4070_v43 = vld [vmem:[#allocation5 + $0x140] ss:$8 sps:$4 sm:$0xff]  }
 0x181   : > { %v1047_v48 = vsel %vm1041_vm0, %v1043_v45, %v1046_v46  ;;  %v1028_v49 = vpop.f32.mrb[0].mxu1  ;;  %v4073_v45 = vld [vmem:[#allocation5 + $0x150] ss:$8 sps:$4 sm:$0xff]   ;;  %v4078_v46 = vld [vmem:[#allocation5 + $0x164] ss:$8 sps:$4 sm:$0xff]  }
 0x182   : > { %v1262_v50 = vrot.slane %v1028_v49, 1  ;;  %v1030_v51 = vpop.f32.mrb[1].mxu1  ;;  %v4079_v49 = vld [vmem:[#allocation5 + $0x170] ss:$8 sps:$4 sm:$0xff]  }
 0x183   : > { %v1265_v52 = vrot.slane %v1030_v51, 1  ;;  %v1032_v53 = vpop.f32.mrb[2].mxu1  ;;  %v4082_v51 = vld [vmem:[#allocation5 + $0x180] ss:$8 sps:$4 sm:$0xff]  }
 0x184   : > { %v1263_v54 = vrot.slane %v1032_v53, 1  ;;  %v1034_v55 = vpop.f32.mrb[3].mxu1  ;;  %v4085_v53 = vld [vmem:[#allocation5 + $0x190] ss:$8 sps:$4 sm:$0xff]  }
 0x185   : > { %v1266_v56 = vrot.slane %v1034_v55, 1  ;;  %v4088_v55 = vld [vmem:[#allocation5 + $0x1a0] ss:$8 sps:$4 sm:$0xff]  }
 0x186   : > { %v1264_v57 = vsel %vm1261_vm1, %v1262_v50, %v1263_v54  ;;  %v1272_v14 = vsel %vm1261_vm1, %v1263_v54, 0.0  ;;  %v4084_v50 = vld [vmem:[#allocation5 + $0x184] ss:$8 sps:$4 sm:$0xff]  }
 0x187   : > { %v1267_v58 = vsel %vm1261_vm1, %v1265_v52, %v1266_v56  ;;  %v1273_v18 = vsel %vm1261_vm1, %v1266_v56, 0.0  ;;  %v4087_v52 = vld [vmem:[#allocation5 + $0x194] ss:$8 sps:$4 sm:$0xff]   ;;  %v4090_v54 = vld [vmem:[#allocation5 + $0x1a4] ss:$8 sps:$4 sm:$0xff]  }
 0x188   : > { %v4093_v56 = vld [vmem:[#allocation5 + $0x1b4] ss:$8 sps:$4 sm:$0xff]  }
 0x1bb   : > { %v1248_v1 = vpop.f32.mrb[4].mxu0 }
 0x1bc   : > { %v1249_v3 = vadd.f32 %v1248_v1, %v1052_v0  ;;  %v1250_v6 = vpop.f32.mrb[5].mxu0  ;;  %v4102_v0 = vld [vmem:[#allocation5 + $0x1e4] ss:$8 sps:$4 sm:$0xff]   ;;  %v4100_v1 = vld [vmem:[#allocation5 + $0x1e0] ss:$8 sps:$4 sm:$0xff]  }
 0x1bd   : > { %v1251_v7 = vadd.f32 %v1250_v6, %v1053_v5  ;;  %v1252_v9 = vpop.f32.mrb[6].mxu0 }
 0x1be   : > { %v1274_v10 = vadd.f32 %v1264_v57, %v1249_v3  ;;  %v1253_v12 = vadd.f32 %v1252_v9, %v1045_v47  ;;  %v1254_v13 = vpop.f32.mrb[7].mxu0  ;;  %v4076_v47 = vld [vmem:[#allocation5 + $0x160] ss:$8 sps:$4 sm:$0xff]   ;;  %v4091_v57 = vld [vmem:[#allocation5 + $0x1b0] ss:$8 sps:$4 sm:$0xff]  }
 0x1bf   : > { %v1275_v15 = vadd.f32 %v1267_v58, %v1251_v7  ;;  %v1255_v16 = vadd.f32 %v1254_v13, %v1047_v48  ;;  %v4081_v48 = vld [vmem:[#allocation5 + $0x174] ss:$8 sps:$4 sm:$0xff]   ;;  %v4096_v58 = vld [vmem:[#allocation5 + $0x1c4] ss:$8 sps:$4 sm:$0xff]   ;;  %v4103_v3 = vld [vmem:[#allocation5 + $0x1f0] ss:$8 sps:$4 sm:$0xff]  }
 0x1c0   : > { %v1290_v19 = vmul.f32 %v1283_v4, %v1274_v10  ;;  %v1276_v20 = vadd.f32 %v1272_v14, %v1253_v12 }
 0x1c1   : > { %v1291_v21 = vmul.f32 %v1287_v8, %v1275_v15  ;;  %v1277_v22 = vadd.f32 %v1273_v18, %v1255_v16 }
 0x1c2   : > { %v1306_v23 = vadd.f32 %v1299_v11, %v1290_v19  ;;  %v1292_v24 = vmul.f32 %v1283_v4, %v1276_v20 }
 0x1c3   : > { %v1293_v25 = vmul.f32 %v1287_v8, %v1277_v22  ;;  %v1307_v26 = vadd.f32 %v1303_v17, %v1291_v21 }
 0x1c4   : > { %v1308_v27 = vadd.f32 %v1299_v11, %v1292_v24  ;;  %v1310_v29 = vmax.f32 %v1306_v23, 0.0  ;;  %v2059_v24 = vld [vmem:[%s4928_s5] sm:$0x3] }
 0x1c5   : > { %v1309_v28 = vadd.f32 %v1303_v17, %v1293_v25  ;;  %v1311_v31 = vmax.f32 %v1307_v26, 0.0 }
 0x1c6   : > { %v1312_v30 = vmax.f32 %v1308_v27, 0.0  ;;  %v2075_v27 = vld [vmem:[%s4929_s6] sm:$0x3] }
 0x1c7   : > { %v1313_v32 = vmax.f32 %v1309_v28, 0.0 }
 0x1c8   : > { %v4574_v33 = vpack.c.bf16 %v1312_v30, %v1310_v29  ;;  %v2064_v29 = vrot.slane %v2059_v24, %v4556_v61 }
 0x1c9   : > { %v1315_v34 = vpack.c.bf16 %v1313_v32, %v1311_v31 }
 0x1cb   : > { %1540 = vmatprep.mubr.bf16.mxu1 %v1315_v34  ;;  %1809 = vmatprep.mubr.bf16.mxu0 %v1315_v34 }
 0x1cc   : > { %1541 = vmatmul.mubr.bf16.vlgmr.msra.gmra.mrb[4].mxu1 %v4574_v33  ;;  %1810 = vmatmul.mubr.bf16.vlgmr.msra.gmra.mrb[8].mxu0 %v4574_v33 }
 0x1cd   : > { %1997 = vmatpush1.bf16.msra.mxu1 %v4058_v35  ;;  %2028 = vmatprep.mubr.bf16.mxu1 %v1315_v34 }
 0x1ce   : > { %1998 = vmatprep.subr.bf16.mxu1 %v4063_v36  ;;  %v2080_v36 = vrot.slane %v2075_v27, %v4556_v61 }
 0x1d1   : > { %1999 = vmatpush1.bf16.msra.mxu1 %v4061_v37 }
 0x1d2   : > { %2000 = vmatprep.subr.bf16.mxu1 %v4066_v38 }
 0x1d5   : > { %2001 = vmatpush1.bf16.msra.mxu1 %v4064_v39 }
 0x1d6   : > { %2002 = vmatprep.subr.bf16.mxu1 %v4069_v40 }
 0x1d9   : > { %2003 = vmatpush1.bf16.msra.mxu1 %v4067_v41  ;;  %v2084_v41 = vrot.slane %v2075_v27, %v4561_v63 }
 0x1da   : > { %2004 = vmatprep.subr.bf16.mxu1 %v4072_v42 }
 0x1dd   : > { %2005 = vmatpush1.bf16.msra.mxu1 %v4070_v43 }
 0x1de   : > { %2006 = vmatprep.subr.bf16.mxu1 %v4075_v44 }
 0x1e1   : > { %2007 = vmatpush1.bf16.msra.mxu1 %v4073_v45 }
 0x1e2   : > { %2008 = vmatprep.subr.bf16.mxu1 %v4078_v46 }
 0x1e5   : > { %2009 = vmatpush1.bf16.msra.mxu1 %v4076_v47 }
 0x1e6   : > { %2010 = vmatprep.subr.bf16.mxu1 %v4081_v48 }
 0x1e9   : > { %2011 = vmatpush1.bf16.msra.mxu1 %v4079_v49 }
 0x1ea   : > { %2012 = vmatprep.subr.bf16.mxu1 %v4084_v50 }
 0x1ed   : > { %2013 = vmatpush1.bf16.msra.mxu1 %v4082_v51 }
 0x1ee   : > { %2014 = vmatprep.subr.bf16.mxu1 %v4087_v52 }
 0x1f1   : > { %2015 = vmatpush1.bf16.msra.mxu1 %v4085_v53 }
 0x1f2   : > { %2016 = vmatprep.subr.bf16.mxu1 %v4090_v54  ;;  %v4173_v54 = vld [vmem:[%s4536_s22] sm:$0xff] }
 0x1f5   : > { %2017 = vmatpush1.bf16.msra.mxu1 %v4088_v55 }
 0x1f6   : > { %2018 = vmatprep.subr.bf16.mxu1 %v4093_v56  ;;  %v4174_v56 = vld [vmem:[%s4536_s22 + $0x10] sm:$0xff] }
 0x1f9   : > { %2019 = vmatpush1.bf16.msra.mxu1 %v4091_v57 }
 0x1fa   : > { %2020 = vmatprep.subr.bf16.mxu1 %v4096_v58  ;;  %v4175_v58 = vld [vmem:[%s4536_s22 + $0x8] sm:$0xff] }
 0x1fd   : > { %2021 = vmatpush1.bf16.msra.mxu1 %v4094_v59 }
 0x1fe   : > { %2022 = vmatprep.subr.bf16.mxu1 %v4099_v60  ;;  %v4176_v60 = vld [vmem:[%s4536_s22 + $0x18] sm:$0xff] }
 0x201   : > { %2023 = vmatpush1.bf16.msra.mxu1 %v4097_v62 }
 0x202   : > { %2024 = vmatprep.subr.bf16.mxu1 %v4102_v0 }
 0x205   : > { %2025 = vmatpush1.bf16.msra.mxu1 %v4100_v1 }
 0x206   : > { %2026 = vmatprep.subr.bf16.mxu1 %v4105_v2 }
 0x209   : > { %2027 = vmatpush1.bf16.msra.mxu1 %v4103_v3 }
 0x20c   : > { %2029 = vmatmul.mubr.bf16.vlgmr.msra.gmra.mrb[8].mxu1 %v4574_v33  ;;  %v2068_v33 = vrot.slane %v2059_v24, %v4561_v63 }
 0x29f   : > { %v1542_v4 = vpop.f32.mrb[4].mxu1  ;;  %v1811_v5 = vpop.f32.mrb[8].mxu0 }
 0x2a0   : > { %v1544_v6 = vpop.f32.mrb[5].mxu1  ;;  %v1813_v7 = vpop.f32.mrb[9].mxu0  ;;  %v1824_v10 = vrot.slane %v1542_v4, 7  ;;  %v2043_v11 = vrot.slane %v1811_v5, 1 }
 0x2a1   : > { %v1546_v8 = vpop.f32.mrb[6].mxu1  ;;  %v1815_v9 = vpop.f32.mrb[10].mxu0  ;;  %v1825_v16 = vrot.slane %v1544_v6, 7  ;;  %v2046_v17 = vrot.slane %v1813_v7, 1 }
 0x2a2   : > { %v1826_v12 = vrot.slane %v1546_v8, 7  ;;  %v2044_v13 = vrot.slane %v1815_v9, 1  ;;  %v1548_v14 = vpop.f32.mrb[7].mxu1  ;;  %v1817_v15 = vpop.f32.mrb[11].mxu0  ;;  %v1834_v25 = vsel %vm1041_vm0, 0.0, %v1824_v10 }
 0x2a3   : > { %v1828_v18 = vrot.slane %v1548_v14, 7  ;;  %v2047_v19 = vrot.slane %v1817_v15, 1  ;;  %v1835_v30 = vsel %vm1041_vm0, 0.0, %v1825_v16 }
 0x2a4   : > { %v2045_v20 = vsel %vm1261_vm1, %v2043_v11, %v2044_v13  ;;  %v1827_v21 = vsel %vm1041_vm0, %v1824_v10, %v1826_v12  ;;  %v2053_v39 = vsel %vm1261_vm1, %v2044_v13, 0.0 }
 0x2a5   : > { %v2048_v22 = vsel %vm1261_vm1, %v2046_v17, %v2047_v19  ;;  %v1829_v23 = vsel %vm1041_vm0, %v1825_v16, %v1828_v18  ;;  %v2054_v43 = vsel %vm1261_vm1, %v2047_v19, 0.0 }
 0x2df   : > { %v2030_v26 = vpop.f32.mrb[8].mxu1 }
 0x2e0   : > { %v2031_v28 = vadd.f32 %v2030_v26, %v1834_v25  ;;  %v2032_v31 = vpop.f32.mrb[9].mxu1 }
 0x2e1   : > { %v2033_v32 = vadd.f32 %v2032_v31, %v1835_v30  ;;  %v2034_v34 = vpop.f32.mrb[10].mxu1  ;;  %v2156_v30 = vld [vmem:[%s4930_s7] sm:$0xff]  ;;  %v2157_v31 = vld [vmem:[%s4930_s7 + $0x8] sm:$0xff] }
 0x2e2   : > { %v2055_v35 = vadd.f32 %v2045_v20, %v2031_v28  ;;  %v2035_v37 = vadd.f32 %v2034_v34, %v1827_v21  ;;  %v2036_v38 = vpop.f32.mrb[11].mxu1 }
 0x2e3   : > { %v2056_v40 = vadd.f32 %v2048_v22, %v2033_v32  ;;  %v2037_v42 = vadd.f32 %v2036_v38, %v1829_v23  ;;  %v4303_v32 = vmov 0.0|0.0   ;;  %v4306_v38 = vmov 0.0  }
 0x2e4   : > { %v2071_v44 = vmul.f32 %v2064_v29, %v2055_v35  ;;  %v2057_v45 = vadd.f32 %v2053_v39, %v2035_v37  ;;  %3645 = vmatprep.subr.bf16.mxu0 %v4303_v32  ;;  %3648 = vmatprep.subr.bf16.mxu1 %v4303_v32  ;;  %v2454_v32 = vld [vmem:[%s4934_s11 + $0xd0] sm:$0xff] }
 0x2e5   : > { %v2072_v46 = vmul.f32 %v2068_v33, %v2056_v40  ;;  %v2058_v47 = vadd.f32 %v2054_v43, %v2037_v42  ;;  %3635 = vmatprep.mubr.msk.f32.mxu0 %vm4305_vm2, %v4306_v38  ;;  %3642 = vmatprep.mubr.msk.f32.mxu1 %vm4305_vm2, %v4306_v38 }
 0x2e6   : > { %v2087_v48 = vadd.f32 %v2080_v36, %v2071_v44  ;;  %v2073_v49 = vmul.f32 %v2064_v29, %v2057_v45 }
 0x2e7   : > { %v2088_v50 = vadd.f32 %v2084_v41, %v2072_v46  ;;  %v2074_v51 = vmul.f32 %v2068_v33, %v2058_v47  ;;  %v3646_v33 = vpack.c.bf16 %v2157_v31, %v2156_v30  ;;  %v2452_v31 = vld [vmem:[%s4934_s11 + $0xc0] sm:$0xff] }
 0x2e8   : > { %v2089_v52 = vadd.f32 %v2080_v36, %v2073_v49  ;;  %v4598_v55 = vadd.f32 %v4173_v54, %v2087_v48  ;;  %v2309_v48 = vld [vmem:[%s4932_s9] sm:$0xff]  ;;  %v2430_v54 = vld [vmem:[%s4934_s11 + $0x10] sm:$0xff] }
 0x2e9   : > { %v2090_v53 = vadd.f32 %v2084_v41, %v2074_v51  ;;  %v4604_v59 = vadd.f32 %v4175_v58, %v2088_v50  ;;  %3647 = vmatpush3.bf16.msra.mxu0 %v3646_v33  ;;  %3650 = vmatpush3.bf16.msra.mxu1 %v3646_v33  ;;  %v2312_v49 = vcombine.high %v2309_v48, %v2309_v48  ;;  %v2429_v50 = vld [vmem:[%s4934_s11 + $0x8] sm:$0xff]  ;;  %v2431_v51 = vld [vmem:[%s4934_s11 + $0x18] sm:$0xff] }
 0x2ea   : > { %v4601_v57 = vadd.f32 %v4174_v56, %v2089_v52  ;;  %v2428_v52 = vld [vmem:[%s4934_s11] sm:$0xff]  ;;  %v2433_v56 = vld [vmem:[%s4934_s11 + $0x28] sm:$0xff]  ;;  %v2435_v58 = vld [vmem:[%s4934_s11 + $0x38] sm:$0xff] }
 0x2eb   : > { %v4607_v62 = vadd.f32 %v4176_v60, %v2090_v53  ;;  %3576 = vmatprep.subr.msk.mxu0 %vm2328_vm4, %v2312_v49  ;;  %v3651_v53 = vpack.c.bf16 %v2431_v51, %v2429_v50  ;;  %v3653_v60 = vpack.c.bf16 %v2430_v54, %v2428_v52  ;;  %v2457_v33 = vld [vmem:[%s4934_s11 + $0xe8] sm:$0xff]  ;;  %v2463_v51 = vld [vmem:[%s4934_s11 + $0x118] sm:$0xff]  ;;  %v2462_v54 = vld [vmem:[%s4934_s11 + $0x110] sm:$0xff] }
 0x2ec   : > { %v2125_v0 = vadd.f32 %v4601_v57, %v4598_v55  ;;  %v2095_v1 = vmax.f32 %v4598_v55, %v4601_v57  ;;  %v2461_v50 = vld [vmem:[%s4934_s11 + $0x108] sm:$0xff] }
 0x2ed   : > { %v2132_v2 = vadd.f32 %v4607_v62, %v4604_v59  ;;  %v2102_v3 = vmax.f32 %v4604_v59, %v4607_v62  ;;  %3652 = vmatprep.subr.bf16.mxu1 %v3651_v53  ;;  %v3683_v52 = vpack.c.bf16 %v2463_v51, %v2461_v50  ;;  %v2460_v53 = vld [vmem:[%s4934_s11 + $0x100] sm:$0xff] }
 0x2ee   : > { %v2126_v4 = vrot.slane %v2125_v0, 4  ;;  %v2096_v5 = vrot.slane %v2095_v1, 4 }
 0x2ef   : > { %v2133_v6 = vrot.slane %v2132_v2, 4  ;;  %v2103_v7 = vrot.slane %v2102_v3, 4 }
 0x2f0   : > { %v2127_v8 = vadd.f32 %v2126_v4, %v2125_v0  ;;  %v2097_v9 = vmax.f32 %v2095_v1, %v2096_v5  ;;  %v3655_v0 = vpack.c.bf16 %v2435_v58, %v2433_v56  ;;  %v2432_v1 = vld [vmem:[%s4934_s11 + $0x20] sm:$0xff]  ;;  %v2439_v4 = vld [vmem:[%s4934_s11 + $0x58] sm:$0xff]  ;;  %v3685_v56 = vpack.c.bf16 %v2462_v54, %v2460_v53  ;;  %v2465_v58 = vld [vmem:[%s4934_s11 + $0x128] sm:$0xff] }
 0x2f1   : > { %v2134_v10 = vadd.f32 %v2133_v6, %v2132_v2  ;;  %v2104_v11 = vmax.f32 %v2102_v3, %v2103_v7  ;;  %v2434_v2 = vld [vmem:[%s4934_s11 + $0x30] sm:$0xff]  ;;  %v2437_v3 = vld [vmem:[%s4934_s11 + $0x48] sm:$0xff]  ;;  %v2436_v7 = vld [vmem:[%s4934_s11 + $0x40] sm:$0xff] }
 0x2f2   : > { %v2128_v12 = vrot.slane %v2127_v8, 2  ;;  %v2098_v13 = vrot.slane %v2097_v9, 2  ;;  %v3657_v5 = vpack.c.bf16 %v2434_v2, %v2432_v1  ;;  %v3659_v6 = vpack.c.bf16 %v2439_v4, %v2437_v3  ;;  %v2464_v1 = vld [vmem:[%s4934_s11 + $0x120] sm:$0xff]  ;;  %v2466_v2 = vld [vmem:[%s4934_s11 + $0x130] sm:$0xff]  ;;  %v2469_v4 = vld [vmem:[%s4934_s11 + $0x148] sm:$0xff] }
 0x2f3   : > { %v2135_v14 = vrot.slane %v2134_v10, 2  ;;  %v2105_v15 = vrot.slane %v2104_v11, 2  ;;  %v3689_v3 = vpack.c.bf16 %v2466_v2, %v2464_v1 }
 0x2f4   : > { %v2129_v16 = vadd.f32 %v2128_v12, %v2127_v8  ;;  %v2099_v17 = vmax.f32 %v2097_v9, %v2098_v13  ;;  %v2438_v8 = vld [vmem:[%s4934_s11 + $0x50] sm:$0xff]  ;;  %v2441_v9 = vld [vmem:[%s4934_s11 + $0x68] sm:$0xff]  ;;  %v2440_v13 = vld [vmem:[%s4934_s11 + $0x60] sm:$0xff] }
 0x2f5   : > { %v2136_v18 = vadd.f32 %v2135_v14, %v2134_v10  ;;  %v2106_v19 = vmax.f32 %v2104_v11, %v2105_v15  ;;  %v2443_v10 = vld [vmem:[%s4934_s11 + $0x78] sm:$0xff]  ;;  %v3661_v11 = vpack.c.bf16 %v2438_v8, %v2436_v7  ;;  %v2442_v14 = vld [vmem:[%s4934_s11 + $0x70] sm:$0xff]  ;;  %v2445_v15 = vld [vmem:[%s4934_s11 + $0x88] sm:$0xff] }
 0x2f6   : > { %v2130_v20 = vrot.slane %v2129_v16, 1  ;;  %v2100_v22 = vrot.slane %v2099_v17, 1  ;;  %v3663_v12 = vpack.c.bf16 %v2443_v10, %v2441_v9  ;;  %v2468_v7 = vld [vmem:[%s4934_s11 + $0x140] sm:$0xff]  ;;  %v2470_v8 = vld [vmem:[%s4934_s11 + $0x150] sm:$0xff]  ;;  %v2473_v10 = vld [vmem:[%s4934_s11 + $0x168] sm:$0xff] }
 0x2f7   : > { %v2137_v21 = vrot.slane %v2136_v18, 1  ;;  %v2107_v23 = vrot.slane %v2106_v19, 1  ;;  %v3693_v9 = vpack.c.bf16 %v2470_v8, %v2468_v7 }
 0x2f8   : > { %v2131_v24 = vadd.f32 %v2130_v20, %v2129_v16  ;;  %v2101_v27 = vmax.f32 %v2099_v17, %v2100_v22  ;;  %v2447_v16 = vld [vmem:[%s4934_s11 + $0x98] sm:$0xff]  ;;  %v3665_v17 = vpack.c.bf16 %v2442_v14, %v2440_v13  ;;  %v2446_v20 = vld [vmem:[%s4934_s11 + $0x90] sm:$0xff]  ;;  %v2472_v13 = vld [vmem:[%s4934_s11 + $0x160] sm:$0xff] }
 0x2f9   : > { %v2138_v25 = vadd.f32 %v2137_v21, %v2136_v18  ;;  %v2108_v28 = vmax.f32 %v2106_v19, %v2107_v23  ;;  %v3667_v18 = vpack.c.bf16 %v2447_v16, %v2445_v15  ;;  %v2444_v19 = vld [vmem:[%s4934_s11 + $0x80] sm:$0xff]  ;;  %v2449_v21 = vld [vmem:[%s4934_s11 + $0xa8] sm:$0xff]  ;;  %v2451_v22 = vld [vmem:[%s4934_s11 + $0xb8] sm:$0xff] }
 0x2fa   : > { %v3669_v23 = vpack.c.bf16 %v2446_v20, %v2444_v19  ;;  %v2474_v14 = vld [vmem:[%s4934_s11 + $0x170] sm:$0xff]  ;;  %v2477_v16 = vld [vmem:[%s4934_s11 + $0x188] sm:$0xff]  ;;  %v2476_v19 = vld [vmem:[%s4934_s11 + $0x180] sm:$0xff] }
 0x2fb   : > { %v2139_v26 = vadd.f32 %v2138_v25, %v2131_v24  ;;  %v2109_v29 = vmax.f32 %v2101_v27, %v2108_v28  ;;  %v3671_v24 = vpack.c.bf16 %v2451_v22, %v2449_v21  ;;  %v2448_v25 = vld [vmem:[%s4934_s11 + $0xa0] sm:$0xff]  ;;  %v2453_v27 = vld [vmem:[%s4934_s11 + $0xc8] sm:$0xff]  ;;  %v2455_v28 = vld [vmem:[%s4934_s11 + $0xd8] sm:$0xff]  ;;  %v3697_v15 = vpack.c.bf16 %v2474_v14, %v2472_v13 }
 0x2fc   : > { %v3675_v30 = vpack.c.bf16 %v2455_v28, %v2453_v27  ;;  %v2478_v20 = vld [vmem:[%s4934_s11 + $0x190] sm:$0xff]  ;;  %v2481_v22 = vld [vmem:[%s4934_s11 + $0x1a8] sm:$0xff]  ;;  %v2487_v28 = vld [vmem:[%s4934_s11 + $0x1d8] sm:$0xff] }
 0x2fd   : > { %2141 = vrot.lane.b32.xlu0 %v2139_v26, %s4302_s24  ;;  %v3701_v21 = vpack.c.bf16 %v2478_v20, %v2476_v19  ;;  %v2485_v27 = vld [vmem:[%s4934_s11 + $0x1c8] sm:$0xff] }
 0x301   : > { %2111 = vrot.lane.b32.xlu0 %v2109_v29, %s4302_s24 }
 0x36f   : > { %v2142_v34 = vpop.permute.xlu0 %2141 }
 0x370   : > { %v2144_v35 = vadd.f32 %v2142_v34, %v2139_v26  ;;  %v2450_v26 = vld [vmem:[%s4934_s11 + $0xb0] sm:$0xff]  ;;  %v2459_v34 = vld [vmem:[%s4934_s11 + $0xf8] sm:$0xff] }
 0x372   : > { %2146 = vrot.lane.b32.xlu1 %v2144_v35, %s4304_s14 }
 0x373   : > { %v2112_v36 = vpop.permute.xlu0 %2111 }
 0x374   : > { %v2114_v37 = vmax.f32 %v2109_v29, %v2112_v36  ;;  %v3673_v29 = vpack.c.bf16 %v2450_v26, %v2448_v25  ;;  %v3679_v36 = vpack.c.bf16 %v2459_v34, %v2457_v33  ;;  %v2482_v26 = vld [vmem:[%s4934_s11 + $0x1b0] sm:$0xff]  ;;  %v2489_v33 = vld [vmem:[%s4934_s11 + $0x1e8] sm:$0xff]  ;;  %v2491_v34 = vld [vmem:[%s4934_s11 + $0x1f8] sm:$0xff] }
 0x376   : > { %2116 = vrot.lane.b32.xlu1 %v2114_v37, %s4304_s14 }
 0x3e4   : > { %v2147_v39 = vpop.permute.xlu1 %2146 }
 0x3e5   : > { %v2149_v40 = vadd.f32 %v2147_v39, %v2144_v35  ;;  %v3677_v35 = vpack.c.bf16 %v2454_v32, %v2452_v31  ;;  %v2484_v31 = vld [vmem:[%s4934_s11 + $0x1c0] sm:$0xff]  ;;  %v2486_v32 = vld [vmem:[%s4934_s11 + $0x1d0] sm:$0xff] }
 0x3e7   : > { %2151 = vrot.lane.b32.xlu0 %v2149_v40, %s4307_s15 }
 0x3e8   : > { %v2117_v41 = vpop.permute.xlu1 %2116 }
 0x3e9   : > { %v2119_v42 = vmax.f32 %v2114_v37, %v2117_v41  ;;  %v2158_v37 = vld [vmem:[%s4931_s8] sm:$0x1] }
 0x3eb   : > { %2121 = vrot.lane.b32.xlu1 %v2119_v42, %s4307_s15 }
 0x459   : > { %v2152_v43 = vpop.permute.xlu0 %2151 }
 0x45a   : > { %v2154_v44 = vadd.f32 %v2152_v43, %v2149_v40 }
 0x45c   : > { %v2155_v45 = vmul.f32 0.00390625, %v2154_v44 }
 0x45d   : > { %v2122_v46 = vpop.permute.xlu1 %2121 }
 0x45e   : > { %v2124_v47 = vmax.f32 %v2119_v42, %v2122_v46  ;;  %3636 = vmatmul.mubr.msk.f32.vlgmr.msra.gmra.mrb[12].mxu0 %vm2159_vm3, %v2155_v45 }
 0x45f   : > { %2397 = vmatprep.mubr.f32.mxu0 %v4306_v38  ;;  %3577 = vmatpush1.msk.msra.mxu0 %vm2328_vm4, %v2309_v48  ;;  %v2458_v48 = vld [vmem:[%s4934_s11 + $0xf0] sm:$0xff] }
 0x460   : > { %3643 = vmatmul.mubr.msk.f32.vlgmr.msra.gmra.mrb[12].mxu1 %vm2159_vm3, %v2124_v47  ;;  %v2456_v47 = vld [vmem:[%s4934_s11 + $0xe0] sm:$0xff] }
 0x461   : > { %3654 = vmatpush1.bf16.msra.mxu1 %v3653_v60  ;;  %v3681_v49 = vpack.c.bf16 %v2458_v48, %v2456_v47  ;;  %v2467_v60 = vld [vmem:[%s4934_s11 + $0x138] sm:$0xff] }
 0x462   : > { %3656 = vmatprep.subr.bf16.mxu1 %v3655_v0  ;;  %v3687_v0 = vpack.c.bf16 %v2467_v60, %v2465_v58 }
 0x465   : > { %3658 = vmatpush1.bf16.msra.mxu1 %v3657_v5  ;;  %v2471_v5 = vld [vmem:[%s4934_s11 + $0x158] sm:$0xff] }
 0x466   : > { %3660 = vmatprep.subr.bf16.mxu1 %v3659_v6  ;;  %v3691_v6 = vpack.c.bf16 %v2471_v5, %v2469_v4 }
 0x469   : > { %3662 = vmatpush1.bf16.msra.mxu1 %v3661_v11  ;;  %v2475_v11 = vld [vmem:[%s4934_s11 + $0x178] sm:$0xff] }
 0x46a   : > { %3664 = vmatprep.subr.bf16.mxu1 %v3663_v12  ;;  %v3695_v12 = vpack.c.bf16 %v2475_v11, %v2473_v10 }
 0x46d   : > { %3666 = vmatpush1.bf16.msra.mxu1 %v3665_v17  ;;  %v2479_v17 = vld [vmem:[%s4934_s11 + $0x198] sm:$0xff] }
 0x46e   : > { %3668 = vmatprep.subr.bf16.mxu1 %v3667_v18  ;;  %v3699_v18 = vpack.c.bf16 %v2479_v17, %v2477_v16 }
 0x471   : > { %3670 = vmatpush1.bf16.msra.mxu1 %v3669_v23  ;;  %v2483_v23 = vld [vmem:[%s4934_s11 + $0x1b8] sm:$0xff] }
 0x472   : > { %3672 = vmatprep.subr.bf16.mxu1 %v3671_v24  ;;  %v2480_v24 = vld [vmem:[%s4934_s11 + $0x1a0] sm:$0xff]  ;;  %v3703_v25 = vpack.c.bf16 %v2483_v23, %v2481_v22 }
 0x475   : > { %3674 = vmatpush1.bf16.msra.mxu1 %v3673_v29  ;;  %v3705_v29 = vpack.c.bf16 %v2482_v26, %v2480_v24 }
 0x476   : > { %3676 = vmatprep.subr.bf16.mxu1 %v3675_v30  ;;  %v3707_v30 = vpack.c.bf16 %v2487_v28, %v2485_v27  ;;  %v4109_v28 = vld [vmem:[#allocation7 + $0x24] ss:$8 sps:$4 sm:$0xff]  }
 0x477   : > { %2704 = vmatprep.subr.bf16.mxu0 %v4109_v28  ;;  %v4131_v28 = vld [vmem:[#allocation7 + $0x80] ss:$8 sps:$4 sm:$0xff]  }
 0x479   : > { %3678 = vmatpush1.bf16.msra.mxu1 %v3677_v35  ;;  %v3709_v35 = vpack.c.bf16 %v2486_v32, %v2484_v31  ;;  %v4112_v31 = vld [vmem:[#allocation7 + $0x34] ss:$8 sps:$4 sm:$0xff]  }
 0x47a   : > { %3680 = vmatprep.subr.bf16.mxu1 %v3679_v36  ;;  %v3711_v36 = vpack.c.bf16 %v2491_v34, %v2489_v33  ;;  %v4110_v33 = vld [vmem:[#allocation7 + $0x30] ss:$8 sps:$4 sm:$0xff]   ;;  %v4308_v34 = vmov 0  }
 0x47d   : > { %3682 = vmatpush1.bf16.msra.mxu1 %v3681_v49 }
 0x47e   : > { %3684 = vmatprep.subr.bf16.mxu1 %v3683_v52 }
 0x481   : > { %3686 = vmatpush1.bf16.msra.mxu1 %v3685_v56 }
 0x482   : > { %3688 = vmatprep.subr.bf16.mxu1 %v3687_v0 }
 0x485   : > { %3690 = vmatpush1.bf16.msra.mxu1 %v3689_v3 }
 0x486   : > { %3692 = vmatprep.subr.bf16.mxu1 %v3691_v6 }
 0x489   : > { %3694 = vmatpush1.bf16.msra.mxu1 %v3693_v9 }
 0x48a   : > { %3696 = vmatprep.subr.bf16.mxu1 %v3695_v12 }
 0x48d   : > { %3698 = vmatpush1.bf16.msra.mxu1 %v3697_v15 }
 0x48e   : > { %3700 = vmatprep.subr.bf16.mxu1 %v3699_v18 }
 0x491   : > { %3702 = vmatpush1.bf16.msra.mxu1 %v3701_v21 }
 0x492   : > { %3704 = vmatprep.subr.bf16.mxu1 %v3703_v25 }
 0x495   : > { %3706 = vmatpush1.bf16.msra.mxu1 %v3705_v29 }
 0x496   : > { %3708 = vmatprep.subr.bf16.mxu1 %v3707_v30  ;;  %v4107_v30 = vld [vmem:[#allocation7 + $0x20] ss:$8 sps:$4 sm:$0xff]  }
 0x499   : > { %3710 = vmatpush1.bf16.msra.mxu1 %v3709_v35 }
 0x49a   : > { %3712 = vmatprep.subr.bf16.mxu1 %v3711_v36 }
 0x531   : > { %v2229_v38 = vpop.f32.mrb[12].mxu0 }
 0x532   : > { %v2230_v39 = vadd.f32 %v2229_v38, %v2158_v37  ;;  %v3637_v40 = vpop.f32.mrb[13].mxu0  ;;  %v2490_v38 = vld [vmem:[%s4934_s11 + $0x1f0] sm:$0xff] }
 0x533   : > { %v2303_v41 = vpop.f32.mrb[12].mxu1  ;;  %v2310_v40 = vld [vmem:[%s4947_s21] sm:$0x3] }
 0x534   : > { %v2304_v42 = vadd.f32 %v2303_v41, %v2158_v37  ;;  %v3644_v43 = vpop.f32.mrb[13].mxu1  ;;  %v2233_v44 = vmax.f32 %v2230_v39, 0.0  ;;  %v2488_v37 = vld [vmem:[%s4934_s11 + $0x1e0] sm:$0xff]  ;;  %v2317_v41 = vrot.slane %v2310_v40, %v4556_v61 }
 0x535   : > { %v3713_v39 = vpack.c.bf16 %v2490_v38, %v2488_v37  ;;  %v4115_v37 = vld [vmem:[#allocation7 + $0x4] ss:$8 sps:$4 sm:$0xff]  }
 0x536   : > { %v2307_v45 = vmax.f32 %v2304_v42, 0.0  ;;  %v2321_v42 = vrot.slane %v2310_v40, %v4561_v63 }
 0x537   : > { %3714 = vmatpush1.bf16.msra.mxu1 %v3713_v39 }
 0x538   : > { %v2308_v46 = vadd.f32 %v2307_v45, %v2233_v44 }
 0x53a   : > { %3578 = vmatmul.mubr.msk.f32.vlgmr.msra.gmra.mrb[14].mxu0 %vm2324_vm5, %v2308_v46 }
 0x53b   : > { %2705 = vmatpush1.bf16.msra.mxu0 %v4107_v30  ;;  %2736 = vmatprep.mubr.bf16.mxu0 %v4308_v34 }
 0x53c   : > { %2706 = vmatprep.subr.bf16.mxu0 %v4112_v31  ;;  %v4134_v31 = vld [vmem:[#allocation7 + $0x90] ss:$8 sps:$4 sm:$0xff]  }
 0x53f   : > { %2707 = vmatpush1.bf16.msra.mxu0 %v4110_v33 }
 0x540   : > { %2769 = vmatprep.subr.bf16.mxu0 %v4115_v37  ;;  %v4142_v37 = vld [vmem:[#allocation7 + $0xb4] ss:$8 sps:$4 sm:$0xff]  }
 0x60d   : > { %v2399_v43 = vpop.f32.mrb[14].mxu0 }
 0x60e   : > { %v2400_v44 = vadd.f32 %v2399_v43, %v2317_v41  ;;  %v2401_v45 = vpop.f32.mrb[15].mxu0 }
 0x60f   : > { %v2402_v46 = vadd.f32 %v2401_v45, %v2321_v42 }
 0x610   : > { %v3579_v47 = vmul.f32 -1.442695, %v2400_v44 }
 0x611   : > { %v3580_v48 = vmul.f32 -1.442695, %v2402_v46 }
 0x612   : > { %4149 = vpow2.f32 %v3579_v47 }
 0x613   : > { %4151 = vpow2.f32 %v3580_v48 }
 0x61c   : > { %v4150_v49 = vpop.eup %4149 }
 0x61d   : > { %v4152_v50 = vpop.eup %4151  ;;  %v2410_v51 = vadd.f32 1.0, %v4150_v49 }
 0x61e   : > { %v2411_v52 = vadd.f32 1.0, %v4152_v50 }
 0x61f   : > { %4153 = vrcp.f32 %v2410_v51 }
 0x620   : > { %4155 = vrcp.f32 %v2411_v52 }
 0x629   : > { %v4154_v53 = vpop.eup %4153 }
 0x62a   : > { %v4156_v54 = vpop.eup %4155  ;;  %v2419_v56 = vrot.slane %v4154_v53, %v4556_v61 }
 0x62b   : > { %v2423_v63 = vrot.slane %v4156_v54, %v4556_v61 }
 0x62c   : > { %v4840_v60 = vmul.f32 %v2419_v56, %v4598_v55  ;;  %v4849_v1 = vmul.f32 %v2419_v56, %v4601_v57 }
 0x62d   : > { %v4837_v58 = vmul.f32 %v2423_v63, %v4604_v59  ;;  %v4844_v0 = vmul.f32 %v2423_v63, %v4607_v62 }
 0x62f   : > { %2556 = vmatprep.mubr.f32.mxu1 %v4837_v58 }
 0x630   : > { %2557 = vmatmul.mubr.f32.vlgmr.msra.gmra.mrb[14].mxu1 %v4840_v60 }
 0x631   : > { %2562 = vmatprep.mubr.f32.mxu1 %v4844_v0 }
 0x634   : > { %2563 = vmatmul.mubr.f32.gmra.mrb[16].mxu1 %v4849_v1 }
 0x703   : > { %v2558_v61 = vpop.f32.mrb[14].mxu1 }
 0x704   : > { %v2560_v59 = vpop.f32.mrb[15].mxu1 }
 0x705   : > { %v2569_v2 = vmax.f32 %v2558_v61, %v2560_v59  ;;  %v2601_v3 = vadd.f32 %v2560_v59, %v2558_v61 }
 0x707   : > { %2605 = vrot.lane.b32.xlu0 %v2601_v3, %s4302_s24  ;;  %v2564_v55 = vpop.f32.mrb[16].mxu1 }
 0x708   : > { %v2566_v4 = vpop.f32.mrb[17].mxu1 }
 0x709   : > { %v2570_v5 = vmax.f32 %v2564_v55, %v2566_v4  ;;  %v2602_v62 = vadd.f32 %v2566_v4, %v2564_v55 }
 0x70b   : > { %v3798_v6 = vpack.i.bf16 %v2570_v5, %v2569_v2  ;;  %2607 = vrot.lane.b32.xlu1 %v2602_v62, %s4302_s24 }
 0x70d   : > { %3799 = vrot.lane.b32.xlu0 %v3798_v6, %s4302_s24  ;;  %s4309_s24 = smov 16  }
 0x779   : > { %v2606_v7 = vpop.permute.xlu0 %2605 }
 0x77a   : > { %v2611_v57 = vadd.f32 %v2606_v7, %v2601_v3  ;;  %v4113_v3 = vld [vmem:[#allocation7] ss:$8 sps:$4 sm:$0xff]  }
 0x77c   : > { %2615 = vrot.lane.b32.xlu1 %v2611_v57, %s4304_s14 }
 0x77d   : > { %v2608_v8 = vpop.permute.xlu1 %2607 }
 0x77e   : > { %v2612_v9 = vadd.f32 %v2608_v8, %v2602_v62 }
 0x77f   : > { %v3800_v10 = vpop.permute.xlu0 %3799 }
 0x780   : > { %v3802_v11 = vunpack.i.h.bf16 %v3800_v10  ;;  %v3801_v12 = vunpack.i.l.bf16 %v3800_v10  ;;  %2617 = vrot.lane.b32.xlu0 %v2612_v9, %s4304_s14  ;;  %v4119_v10 = vld [vmem:[#allocation7 + $0x40] ss:$8 sps:$4 sm:$0xff]  }
 0x782   : > { %v2580_v13 = vmax.f32 %v2570_v5, %v3802_v11  ;;  %v2579_v14 = vmax.f32 %v2569_v2, %v3801_v12  ;;  %v4118_v5 = vld [vmem:[#allocation7 + $0x14] ss:$8 sps:$4 sm:$0xff]   ;;  %v4122_v12 = vld [vmem:[#allocation7 + $0x50] ss:$8 sps:$4 sm:$0xff]  }
 0x783   : > { %v4124_v11 = vld [vmem:[#allocation7 + $0x54] ss:$8 sps:$4 sm:$0xff]  }
 0x784   : > { %v3803_v15 = vpack.i.bf16 %v2580_v13, %v2579_v14 }
 0x786   : > { %3804 = vrot.lane.b32.xlu1 %v3803_v15, %s4304_s14  ;;  %s3219_s14 = sld [smem:[#allocation8]] }
 0x7ee   : > { %v2616_v16 = vpop.permute.xlu1 %2615 }
 0x7ef   : > { %v2621_v17 = vadd.f32 %v2616_v16, %v2611_v57  ;;  %v4116_v57 = vld [vmem:[#allocation7 + $0x10] ss:$8 sps:$4 sm:$0xff]   ;;  %v4125_v16 = vld [vmem:[#allocation7 + $0x60] ss:$8 sps:$4 sm:$0xff]  }
 0x7f1   : > { %2625 = vrot.lane.b32.xlu0 %v2621_v17, %s4307_s15 }
 0x7f2   : > { %v2618_v18 = vpop.permute.xlu0 %2617 }
 0x7f3   : > { %v2622_v19 = vadd.f32 %v2618_v18, %v2612_v9  ;;  %v4121_v9 = vld [vmem:[#allocation7 + $0x44] ss:$8 sps:$4 sm:$0xff]  }
 0x7f5   : > { %2627 = vrot.lane.b32.xlu1 %v2622_v19, %s4307_s15 }
 0x7f8   : > { %v3805_v20 = vpop.permute.xlu1 %3804 }
 0x7f9   : > { %v3807_v21 = vunpack.i.h.bf16 %v3805_v20  ;;  %v3806_v22 = vunpack.i.l.bf16 %v3805_v20  ;;  %v4128_v20 = vld [vmem:[#allocation7 + $0x70] ss:$8 sps:$4 sm:$0xff]  }
 0x7fb   : > { %v2590_v23 = vmax.f32 %v2580_v13, %v3807_v21  ;;  %v2589_v24 = vmax.f32 %v2579_v14, %v3806_v22  ;;  %v4127_v13 = vld [vmem:[#allocation7 + $0x64] ss:$8 sps:$4 sm:$0xff]  }
 0x7fc   : > { %v4133_v21 = vld [vmem:[#allocation7 + $0x84] ss:$8 sps:$4 sm:$0xff]  }
 0x7fd   : > { %v3808_v25 = vpack.i.bf16 %v2590_v23, %v2589_v24 }
 0x7ff   : > { %3809 = vrot.lane.b32.xlu0 %v3808_v25, %s4307_s15  ;;  %s3616_s15 = sld [smem:[#allocation8 + $0x1]] }
 0x863   : > { %v2626_v26 = vpop.permute.xlu0 %2625 }
 0x864   : > { %v2631_v27 = vadd.f32 %v2626_v26, %v2621_v17  ;;  %v4130_v17 = vld [vmem:[#allocation7 + $0x74] ss:$8 sps:$4 sm:$0xff]  }
 0x866   : > { %v2633_v35 = vmul.f32 0.0625, %v2631_v27 }
 0x867   : > { %v2628_v29 = vpop.permute.xlu1 %2627 }
 0x868   : > { %v2632_v32 = vadd.f32 %v2628_v29, %v2622_v19  ;;  %v4136_v29 = vld [vmem:[#allocation7 + $0x94] ss:$8 sps:$4 sm:$0xff]  }
 0x86a   : > { %v2634_v36 = vmul.f32 0.0625, %v2632_v32  ;;  %v4139_v32 = vld [vmem:[#allocation7 + $0xa4] ss:$8 sps:$4 sm:$0xff]  }
 0x86c   : > { %v3813_v38 = vpack.i.bf16 %v2634_v36, %v2633_v35  ;;  %v4137_v36 = vld [vmem:[#allocation7 + $0xa0] ss:$8 sps:$4 sm:$0xff]  }
 0x86e   : > { %3814 = vrot.lane.b32.xlu1 %v3813_v38, %s4309_s24 }
 0x871   : > { %v3810_v39 = vpop.permute.xlu0 %3809 }
 0x872   : > { %v3812_v40 = vunpack.i.h.bf16 %v3810_v39  ;;  %v3811_v41 = vunpack.i.l.bf16 %v3810_v39  ;;  %v4140_v39 = vld [vmem:[#allocation7 + $0xb0] ss:$8 sps:$4 sm:$0xff]  }
 0x874   : > { %v2600_v43 = vmax.f32 %v2590_v23, %v3812_v40  ;;  %v2599_v44 = vmax.f32 %v2589_v24, %v3811_v41  ;;  %v4145_v40 = vld [vmem:[#allocation7 + $0xc4] ss:$8 sps:$4 sm:$0xff]  }
 0x8e0   : > { %v3815_v42 = vpop.permute.xlu1 %3814 }
 0x8e1   : > { %v3817_v45 = vunpack.i.h.bf16 %v3815_v42  ;;  %v3816_v46 = vunpack.i.l.bf16 %v3815_v42 }
 0x8e3   : > { %v2643_v47 = vsel %vm2159_vm3, %v2599_v44, %v3816_v46  ;;  %v2644_v48 = vsel %vm2159_vm3, %v2600_v43, %v3817_v45 }
 0x8e4   : > { %v2648_v49 = vrot.slane %v2643_v47, 5  ;;  %v2649_v50 = vrot.slane %v2644_v48, 5  ;;  %v4143_v47 = vld [vmem:[#allocation7 + $0xc0] ss:$8 sps:$4 sm:$0xff]   ;;  %v4148_v48 = vld [vmem:[#allocation7 + $0xd4] ss:$8 sps:$4 sm:$0xff]  }
 0x8e6   : > { %v2650_v51 = vsel %vm2647_vm6, %v2648_v49, %v2649_v50  ;;  %v2654_v52 = vsel %vm2647_vm6, 0.0, %v2648_v49  ;;  %v2655_v53 = vsel %vm2647_vm6, %v2649_v50, 0.0  ;;  %v4146_v50 = vld [vmem:[#allocation7 + $0xd0] ss:$8 sps:$4 sm:$0xff]  }
 0x8e7   : > { %v4864_v54 = vpack.c.bf16 %v2650_v51, %v2654_v52  ;;  %v4866_v56 = vpack.c.bf16 %v2655_v53, %v2655_v53  ;;  %v3220_v51 = vstv %s3219_s14  ;;  %v3226_v53 = vstv %s3616_s15 }
 0x8e9   : > { %v4869_v63 = vshll.u32 %v4864_v54, 16  ;;  %v4872_v61 = vshll.u32 %v4866_v56, 16  ;;  %v4875_v59 = vshrl.u32 %v4864_v54, 16  ;;  %v3146_v62 = vrot.slane %v4864_v54, 3 }
 0x8ea   : > { %v3147_v7 = vrot.slane %v4866_v56, 3  ;;  %v2820_v14 = vrot.slane %v4864_v54, 1  ;;  %v2821_v15 = vrot.slane %v4866_v56, 1  ;;  %v2902_v19 = vshrl.u32 %v4866_v56, 16 }
 0x8eb   : > { %v2673_v2 = vrot.slane %v4869_v63, 1  ;;  %v2678_v4 = vrot.slane %v4872_v61, 1  ;;  %v2899_v22 = vrot.slane %v4875_v59, 1  ;;  %v2900_v23 = vrot.slane %v4869_v63, 2 }
 0x8ec   : > { %v4884_v8 = vsel %vm3145_vm9, %v3146_v62, %v3147_v7  ;;  %v2822_v18 = vsel %vm1261_vm1, %v2820_v14, %v2821_v15  ;;  %v2904_v24 = vrot.slane %v2902_v19, 1  ;;  %v2905_v25 = vrot.slane %v4872_v61, 2 }
 0x8ed   : > { %v2674_v55 = vor.u32 %v2673_v2, %v4875_v59  ;;  %v2901_v26 = vor.u32 %v2900_v23, %v2899_v22  ;;  %v2984_v33 = vrot.slane %v4864_v54, 2  ;;  %v2985_v35 = vrot.slane %v4866_v56, 2 }
 0x8ee   : > { %v2906_v27 = vor.u32 %v2905_v25, %v2904_v24  ;;  %v3063_v41 = vrot.slane %v4875_v59, 2  ;;  %v3064_v42 = vrot.slane %v4869_v63, 3  ;;  %v3066_v43 = vrot.slane %v2902_v19, 2 }
 0x8ef   : > { %v2679_v6 = vsel %vm2667_vm7, %v2674_v55, %v2678_v4  ;;  %v2986_v38 = vsel %vm2983_vm11, %v2984_v33, %v2985_v35  ;;  %v3067_v44 = vrot.slane %v4872_v61, 3 }
 0x8f0   : > { %3585 = vmatmul.mubr.msk.bf16.vlgmr.msra.gmra.mrb[16].mxu0 %vm2700_vm8, %v2679_v6  ;;  %v2907_v30 = vsel %vm2898_vm10, %v2901_v26, %v2906_v27  ;;  %v3065_v45 = vor.u32 %v3064_v42, %v3063_v41 }
 0x8f1   : > { %2770 = vmatpush1.bf16.msra.mxu0 %v4113_v3  ;;  %2801 = vmatprep.mubr.bf16.mxu0 %v4308_v34  ;;  %v3068_v46 = vor.u32 %v3067_v44, %v3066_v43 }
 0x8f2   : > { %2771 = vmatprep.subr.bf16.mxu0 %v4118_v5 }
 0x8f3   : > { %v3069_v49 = vsel %vm3062_vm12, %v3065_v45, %v3068_v46 }
 0x8f5   : > { %2772 = vmatpush1.bf16.msra.mxu0 %v4116_v57 }
 0x8f6   : > { %2846 = vmatprep.subr.bf16.mxu0 %v4121_v9 }
 0x8fc   : > { %3590 = vmatmul.mubr.msk.bf16.vlgmr.msra.gmra.mrb[16].mxu0 %vm2700_vm8, %v4864_v54 }
 0x8fd   : > { %2847 = vmatpush1.bf16.msra.mxu0 %v4119_v10  ;;  %2878 = vmatprep.mubr.bf16.mxu0 %v4308_v34 }
 0x8fe   : > { %2848 = vmatprep.subr.bf16.mxu0 %v4124_v11 }
 0x901   : > { %2849 = vmatpush1.bf16.msra.mxu0 %v4122_v12 }
 0x902   : > { %2931 = vmatprep.subr.bf16.mxu0 %v4127_v13 }
 0x908   : > { %3595 = vmatmul.mubr.msk.bf16.vlgmr.msra.gmra.mrb[16].mxu0 %vm2700_vm8, %v2822_v18 }
 0x909   : > { %2932 = vmatpush1.bf16.msra.mxu0 %v4125_v16  ;;  %2963 = vmatprep.mubr.bf16.mxu0 %v4308_v34 }
 0x90a   : > { %2933 = vmatprep.subr.bf16.mxu0 %v4130_v17 }
 0x90d   : > { %2934 = vmatpush1.bf16.msra.mxu0 %v4128_v20 }
 0x90e   : > { %3010 = vmatprep.subr.bf16.mxu0 %v4133_v21 }
 0x914   : > { %3600 = vmatmul.mubr.msk.bf16.vlgmr.msra.gmra.mrb[16].mxu0 %vm2700_vm8, %v2907_v30 }
 0x915   : > { %3011 = vmatpush1.bf16.msra.mxu0 %v4131_v28  ;;  %3042 = vmatprep.mubr.bf16.mxu0 %v4308_v34 }
 0x916   : > { %3012 = vmatprep.subr.bf16.mxu0 %v4136_v29 }
 0x919   : > { %3013 = vmatpush1.bf16.msra.mxu0 %v4134_v31 }
 0x91a   : > { %3093 = vmatprep.subr.bf16.mxu0 %v4139_v32 }
 0x920   : > { %3605 = vmatmul.mubr.msk.bf16.vlgmr.msra.gmra.mrb[16].mxu0 %vm2700_vm8, %v2986_v38 }
 0x921   : > { %3094 = vmatpush1.bf16.msra.mxu0 %v4137_v36  ;;  %3125 = vmatprep.mubr.bf16.mxu0 %v4308_v34 }
 0x922   : > { %3095 = vmatprep.subr.bf16.mxu0 %v4142_v37 }
 0x925   : > { %3096 = vmatpush1.bf16.msra.mxu0 %v4140_v39 }
 0x926   : > { %3172 = vmatprep.subr.bf16.mxu0 %v4145_v40 }
 0x92c   : > { %3610 = vmatmul.mubr.msk.bf16.vlgmr.msra.gmra.mrb[16].mxu0 %vm2700_vm8, %v3069_v49 }
 0x92d   : > { %3173 = vmatpush1.bf16.msra.mxu0 %v4143_v47  ;;  %3204 = vmatprep.mubr.bf16.mxu0 %v4308_v34 }
 0x92e   : > { %3174 = vmatprep.subr.bf16.mxu0 %v4148_v48 }
 0x931   : > { %3175 = vmatpush1.bf16.msra.mxu0 %v4146_v50 }
 0x938   : > { %3615 = vmatmul.mubr.msk.bf16.vlgmr.msra.gmra.mrb[16].mxu0 %vm2700_vm8, %v4884_v8 }
 0xa0b   : > { %v3206_v52 = vpop.f32.mrb[16].mxu0 }
 0xa0c   : > { %v3221_v54 = vmul.f32 %v3220_v51, %v3206_v52  ;;  %v3208_v56 = vpop.f32.mrb[17].mxu0 }
 0xa0d   : > { %v3222_v63 = vmul.f32 %v3220_v51, %v3208_v56  ;;  %v3210_v61 = vpop.f32.mrb[18].mxu0 }
 0xa0e   : > { %v3227_v59 = vadd.f32 %v3226_v53, %v3221_v54  ;;  %v3223_v2 = vmul.f32 %v3220_v51, %v3210_v61  ;;  %v3212_v3 = vpop.f32.mrb[19].mxu0 }
 0xa0f   : > { %v3228_v55 = vadd.f32 %v3226_v53, %v3222_v63  ;;  %v3224_v4 = vmul.f32 %v3220_v51, %v3212_v3 }
 0xa10   : > { %v3617_v34 = vmul.f32 -1.442695, %v3227_v59  ;;  %v3229_v5 = vadd.f32 %v3226_v53, %v3223_v2 }
 0xa11   : > { %v3618_v62 = vmul.f32 -1.442695, %v3228_v55  ;;  %v3230_v6 = vadd.f32 %v3226_v53, %v3224_v4 }
 0xa12   : > { %4157 = vpow2.f32 %v3617_v34  ;;  %v3619_v7 = vmul.f32 -1.442695, %v3229_v5 }
 0xa13   : > { %4159 = vpow2.f32 %v3618_v62  ;;  %v3620_v57 = vmul.f32 -1.442695, %v3230_v6 }
 0xa14   : > { %4161 = vpow2.f32 %v3619_v7 }
 0xa15   : > { %4163 = vpow2.f32 %v3620_v57 }
 0xa1c   : > { %v4158_v8 = vpop.eup %4157 }
 0xa1d   : > { %v4160_v9 = vpop.eup %4159  ;;  %v3243_v10 = vadd.f32 1.0, %v4158_v8 }
 0xa1e   : > { %v4162_v11 = vpop.eup %4161  ;;  %v3244_v12 = vadd.f32 1.0, %v4160_v9 }
 0xa1f   : > { %v4164_v13 = vpop.eup %4163  ;;  %4165 = vrcp.f32 %v3243_v10  ;;  %v3245_v14 = vadd.f32 1.0, %v4162_v11 }
 0xa20   : > { %4167 = vrcp.f32 %v3244_v12  ;;  %v3246_v15 = vadd.f32 1.0, %v4164_v13 }
 0xa21   : > { %4169 = vrcp.f32 %v3245_v14 }
 0xa22   : > { %4171 = vrcp.f32 %v3246_v15 }
 0xa29   : > { %v4166_v16 = vpop.eup %4165 }
 0xa2a   : > { %v4168_v17 = vpop.eup %4167  ;;  %v3255_v18 = vmul.f32 %v4166_v16, %v4840_v60 }
 0xa2b   : > { %v4170_v19 = vpop.eup %4169  ;;  %v3256_v20 = vmul.f32 %v4168_v17, %v4837_v58 }
 0xa2c   : > { %v4172_v21 = vpop.eup %4171  ;;  %v3259_v22 = vmax.f32 %v3255_v18, 0.0  ;;  %v3257_v23 = vmul.f32 %v4170_v19, %v4849_v1 }
 0xa2d   : > { %v3260_v24 = vmax.f32 %v3256_v20, 0.0  ;;  %v3258_v25 = vmul.f32 %v4172_v21, %v4844_v0 }
 0xa2e   : > { %3263 = vst [vmem:[%s525_s10] sm:$0xff] %v3259_v22  ;;  %v3261_v26 = vmax.f32 %v3257_v23, 0.0 }
 0xa2f   : > { %3264 = vst [vmem:[%s525_s10 + $0x8] sm:$0xff] %v3260_v24  ;;  %v3262_v27 = vmax.f32 %v3258_v25, 0.0 }
 0xa30   : > { %3265 = vst [vmem:[%s525_s10 + $0x10] sm:$0xff] %v3261_v26 }
 0xa31   : > { %3266 = vst [vmem:[%s525_s10 + $0x18] sm:$0xff] %v3262_v27 }
 0xa32 PF: > { %s4949_s30 = sld [smem:[#allocation12_spill]] }
 0xa38   : > { %s27_s29 = sadd.s32 1, %s4949_s30  }
 0xa39   : > { %p24_p2 = scmp.ge.s32.totalorder %s27_s29, 4  }
 0xa3b   :  { %26 = sbr.rel (!%p24_p2) target bundleno = 7 (0x7), region = 134 }
 0xa42   :  { %3288 = vsyncpa [#allocation3], 1 }
 0xa43   :  { %3290 = vsyncpa [#allocation3 + $0x1], 1 }
 0xa44   :  { %3291 = vsyncpa [#allocation6], 1 }
 0xa45   :  { %3292 = vsyncpa [#allocation4], 1 }
 0xa46   :  { %3294 = vsyncpa [#allocation4 + $0x1], 1 }

</bundles_post_ra>
